<compile_context>
chip_gen: v7x
topology: tpu7x:2x2x1
jax: 0.10.0
libtpu: 0.0.40
codegen_flags: <defaults>
</compile_context>

<pallas_src>
import functools

import jax
import jax.numpy as jnp
from jax import lax
from jax.experimental import pallas as pl
from jax.experimental.pallas import tpu as pltpu


# ------------------------------ Pallas kernel --------------------------------
def _cx_kernel(mean_ref, t_ref, x_ref, out_ref, *, sigma, b):
    """Fused contextual loss for a block of batch items.

    mean_ref: (C, 1)       target mean (broadcasts against (C, P) tiles)
    t_ref:    (B, C, P)    target features,    channels x pixels
    x_ref:    (B, C, P)    inference features, channels x pixels
    out_ref:  (B, 1, 128)  per-item -log(mean_p max_q CX[p, q]), lane-broadcast
    """
    mean = mean_ref[...]                                           # (C, 1)
    n_items = t_ref.shape[0]
    inv_sigma = 1.0 / sigma

    for bi in range(n_items):   # static unroll; independent chains per item
        # Center by the target mean; channelwise L2 normalize (EUP rsqrt).
        t = t_ref[bi] - mean                                       # (C, P_t)
        x = x_ref[bi] - mean                                       # (C, P_i)
        t = t * lax.rsqrt(jnp.maximum(jnp.sum(t * t, axis=0, keepdims=True), 1e-12))
        x = x * lax.rsqrt(jnp.maximum(jnp.sum(x * x, axis=0, keepdims=True), 1e-12))

        # Cosine similarity of every (target pixel, inference pixel) pair.
        # Contract dim 0 of both operands -> no wrapper/kernel transpose.
        dist = lax.dot_general(
            t, x, dimension_numbers=(((0,), (0,)), ((), ())),
            preferred_element_type=jnp.float32)                    # (P_t, P_i)

        # Per-inference-pixel divisor from dist directly (no `raw` matrix):
        #   div = min_p (1 - dist[p, q]) / 2 = (1 - max_p dist[p, q]) / 2
        div = (1.0 - jnp.max(dist, axis=0, keepdims=True)) * 0.5   # (1, P_i)
        inv = 1.0 / (div + 1e-5)        # exact: rel-dist chain amplifies error
        s = inv * (0.5 * inv_sigma)                                # (1, P_i)
        c = (b - 0.5 * inv) * inv_sigma                            # (1, P_i)

        # w = exp((b - rel)/sigma) expressed as one affine + exp pass.
        w = jnp.exp(dist * s + c)                                  # (P_t, P_i)

        # CX normalization fused into the row-max reduction.
        r = pl.reciprocal(jnp.sum(w, axis=0, keepdims=True), approx=True)  # (1, P_i)
        cx_max = jnp.max(w * r, axis=1, keepdims=True)             # (P_t, 1)
        p_t = cx_max.shape[0]
        cx_mean = jnp.sum(cx_max, axis=0, keepdims=True) * (1.0 / p_t)     # (1, 1)
        cx_b = -jnp.log(cx_mean)                                   # (1, 1)
        out_ref[bi] = jnp.broadcast_to(cx_b, out_ref.shape[1:])


def _pick_batch_block(n):
    """>=2 grid steps when possible (keep both v7x TCs busy); pack multiple
    items per step when N > 2 so single-TC v5e/v6e amortize step overhead."""
    if n <= 2:
        return 1
    for bb in range(n // 2, 0, -1):
        if n % bb == 0 and n // bb >= 2:
            return bb
    return 1


# --------------------------------- wrapper ------------------------------------
def cx_loss_forward(featureT, featureI, *, sigma=0.1, b=1.0, batch_block=None):
    """featureT, featureI: (N, C, H, W) f32. Returns (CX scalar, CX_B of shape (N,))."""
    N, C, H, W = featureT.shape
    P = H * W

    # Only a (C,)-sized mean reduction + metadata reshapes outside the kernel.
    mean_c = jnp.mean(featureT, axis=(0, 2, 3)).reshape(C, 1)      # (C, 1)
    t = featureT.reshape(N, C, P)                                  # channels x pixels
    x = featureI.reshape(N, C, P)

    if batch_block is None:
        batch_block = _pick_batch_block(N)
    assert N % batch_block == 0, (N, batch_block)
    steps = N // batch_block

    out = pl.pallas_call(
        functools.partial(_cx_kernel, sigma=float(sigma), b=float(b)),
        out_shape=jax.ShapeDtypeStruct((N, 1, 128), jnp.float32),
        grid=(steps,),
        in_specs=[
            pl.BlockSpec((C, 1), lambda i: (0, 0)),                 # invariant mean
            pl.BlockSpec((batch_block, C, P), lambda i: (i, 0, 0)),  # T block
            pl.BlockSpec((batch_block, C, P), lambda i: (i, 0, 0)),  # I block
        ],
        out_specs=pl.BlockSpec((batch_block, 1, 128), lambda i: (i, 0, 0)),
        compiler_params=pltpu.CompilerParams(
            dimension_semantics=("parallel",)),
    )(mean_c, t, x)

    cx_b = out[:, 0, 0]                                            # (N,)
    cx = jnp.mean(cx_b)                                            # scalar
    return cx, cx_b


# ---------------------------- pure-JAX reference -------------------------------
def cx_loss_reference(featureT, featureI, sigma=0.1, b=1.0):
    meanT = jnp.mean(featureT, axis=(0, 2, 3), keepdims=True)
    fI = featureI - meanT
    fT = featureT - meanT
    fI = fI / jnp.sqrt(jnp.sum(fI * fI, axis=1, keepdims=True))
    fT = fT / jnp.sqrt(jnp.sum(fT * fT, axis=1, keepdims=True))
    N, C, H, W = fT.shape
    P = H * W
    tT = fT.reshape(N, C, P)
    tI = fI.reshape(N, C, P)
    dist = jnp.einsum("ncp,ncq->npq", tT, tI,
                      precision=jax.lax.Precision.HIGHEST)          # (N, P_t, P_i)
    raw = (1.0 - dist) / 2.0
    div = jnp.min(raw, axis=1, keepdims=True)
    rel = raw / (div + 1e-5)
    w = jnp.exp((b - rel) / sigma)
    cx = w / jnp.sum(w, axis=1, keepdims=True)
    cx = jnp.max(cx, axis=2)                                        # over I pixels
    cx = jnp.mean(cx, axis=1)                                       # over T pixels
    cx_b = -jnp.log(cx)
    return jnp.mean(cx_b), cx_b


# ------------------------------------ main -------------------------------------
if __name__ == "__main__":
    key = jax.random.PRNGKey(0)
    kT, kI = jax.random.split(key)
    N, C, H, W = 2, 32, 16, 16
    featureT = jax.random.normal(kT, (N, C, H, W), jnp.float32)
    featureI = jax.random.normal(kI, (N, C, H, W), jnp.float32)

    fwd = jax.jit(cx_loss_forward)
    cx, cx_b = fwd(featureT, featureI)
    cx, cx_b = jax.block_until_ready((cx, cx_b))

    ref_cx, ref_cx_b = jax.jit(cx_loss_reference)(featureT, featureI)
    ref_cx, ref_cx_b = jax.block_until_ready((ref_cx, ref_cx_b))

    assert cx_b.shape == (N,), cx_b.shape
    assert cx.shape == (), cx.shape
    assert bool(jnp.all(jnp.isfinite(cx_b))) and bool(jnp.isfinite(cx))
    assert bool(jnp.allclose(cx_b, ref_cx_b, rtol=2e-2, atol=1e-3)), (cx_b, ref_cx_b)
    assert bool(jnp.allclose(cx, ref_cx, rtol=2e-2, atol=1e-3)), (cx, ref_cx)
    print("KERNEL_OK")
</pallas_src>

<mosaic_0001>
module attributes {stable_mosaic.version = 11 : i64} {
  func.func @_cx_kernel(%arg0: i32, %arg1: memref<32x1xf32, #tpu.memory_space<vmem>>, %arg2: memref<1x32x256xf32, #tpu.memory_space<vmem>>, %arg3: memref<1x32x256xf32, #tpu.memory_space<vmem>>, %arg4: memref<1x1x128xf32, #tpu.memory_space<vmem>>) attributes {dimension_semantics = [#tpu.dimension_semantics<parallel>], iteration_bounds = array<i64: 2>, scalar_prefetch = 0 : i64, scratch_operands = 0 : i64, tpu.core_type = #tpu.core_type<tc>, window_params = [{pipeline_mode = #tpu.pipeline_mode<synchronous>, transform_indices = @transform_0, window_bounds = array<i64: 32, 1>}, {transform_indices = @transform_1, window_bounds = array<i64: 1, 32, 256>}, {transform_indices = @transform_2, window_bounds = array<i64: 1, 32, 256>}, {transform_indices = @transform_3, window_bounds = array<i64: 1, 1, 128>}]} {
    %c0 = arith.constant 0 : index
    %c0_0 = arith.constant 0 : index
    %0 = vector.load %arg1[%c0, %c0_0] : memref<32x1xf32, #tpu.memory_space<vmem>>, vector<32x1xf32>
    %c0_1 = arith.constant 0 : index
    %c0_2 = arith.constant 0 : index
    %c0_3 = arith.constant 0 : index
    %1 = vector.load %arg2[%c0_1, %c0_2, %c0_3] : memref<1x32x256xf32, #tpu.memory_space<vmem>>, vector<1x32x256xf32>
    %2 = vector.shape_cast %1 : vector<1x32x256xf32> to vector<32x256xf32>
    %3 = vector.broadcast %0 : vector<32x1xf32> to vector<32x256xf32>
    %4 = arith.subf %2, %3 : vector<32x256xf32>
    %c0_4 = arith.constant 0 : index
    %c0_5 = arith.constant 0 : index
    %c0_6 = arith.constant 0 : index
    %5 = vector.load %arg3[%c0_4, %c0_5, %c0_6] : memref<1x32x256xf32, #tpu.memory_space<vmem>>, vector<1x32x256xf32>
    %6 = vector.shape_cast %5 : vector<1x32x256xf32> to vector<32x256xf32>
    %7 = vector.broadcast %0 : vector<32x1xf32> to vector<32x256xf32>
    %8 = arith.subf %6, %7 : vector<32x256xf32>
    %9 = arith.mulf %4, %4 : vector<32x256xf32>
    %cst = arith.constant dense<0.000000e+00> : vector<256xf32>
    %10 = vector.multi_reduction <add>, %9, %cst [0] : vector<32x256xf32> to vector<256xf32>
    %11 = vector.shape_cast %10 : vector<256xf32> to vector<1x256xf32>
    %cst_7 = arith.constant 9.99999996E-13 : f32
    %12 = vector.broadcast %cst_7 : f32 to vector<1x256xf32>
    %13 = arith.maximumf %11, %12 : vector<1x256xf32>
    %14 = math.rsqrt %13 : vector<1x256xf32>
    %15 = vector.broadcast %14 : vector<1x256xf32> to vector<32x256xf32>
    %16 = arith.mulf %4, %15 : vector<32x256xf32>
    %17 = arith.mulf %8, %8 : vector<32x256xf32>
    %cst_8 = arith.constant dense<0.000000e+00> : vector<256xf32>
    %18 = vector.multi_reduction <add>, %17, %cst_8 [0] : vector<32x256xf32> to vector<256xf32>
    %19 = vector.shape_cast %18 : vector<256xf32> to vector<1x256xf32>
    %cst_9 = arith.constant 9.99999996E-13 : f32
    %20 = vector.broadcast %cst_9 : f32 to vector<1x256xf32>
    %21 = arith.maximumf %19, %20 : vector<1x256xf32>
    %22 = math.rsqrt %21 : vector<1x256xf32>
    %23 = vector.broadcast %22 : vector<1x256xf32> to vector<32x256xf32>
    %24 = arith.mulf %8, %23 : vector<32x256xf32>
    %cst_10 = arith.constant dense<0.000000e+00> : vector<256x256xf32>
    %25 = tpu.matmul %16, %24, %cst_10 {dimension_numbers = #tpu.dot_dimension_numbers<[0], [0], [1], [1], [0, 1, 1, 1], [], []>} : vector<32x256xf32>, vector<32x256xf32>, vector<256x256xf32> -> vector<256x256xf32>
    %cst_11 = arith.constant dense<0xFF800000> : vector<256xf32>
    %26 = vector.multi_reduction <maximumf>, %25, %cst_11 [0] : vector<256x256xf32> to vector<256xf32>
    %27 = vector.shape_cast %26 : vector<256xf32> to vector<1x256xf32>
    %cst_12 = arith.constant 1.000000e+00 : f32
    %28 = vector.broadcast %cst_12 : f32 to vector<1x256xf32>
    %29 = arith.subf %28, %27 : vector<1x256xf32>
    %cst_13 = arith.constant 5.000000e-01 : f32
    %30 = vector.broadcast %cst_13 : f32 to vector<1x256xf32>
    %31 = arith.mulf %29, %30 : vector<1x256xf32>
    %cst_14 = arith.constant 9.99999974E-6 : f32
    %32 = vector.broadcast %cst_14 : f32 to vector<1x256xf32>
    %33 = arith.addf %31, %32 : vector<1x256xf32>
    %cst_15 = arith.constant 1.000000e+00 : f32
    %34 = vector.broadcast %cst_15 : f32 to vector<1x256xf32>
    %35 = arith.divf %34, %33 : vector<1x256xf32>
    %cst_16 = arith.constant 5.000000e+00 : f32
    %36 = vector.broadcast %cst_16 : f32 to vector<1x256xf32>
    %37 = arith.mulf %35, %36 : vector<1x256xf32>
    %cst_17 = arith.constant 5.000000e-01 : f32
    %38 = vector.broadcast %cst_17 : f32 to vector<1x256xf32>
    %39 = arith.mulf %38, %35 : vector<1x256xf32>
    %cst_18 = arith.constant 1.000000e+00 : f32
    %40 = vector.broadcast %cst_18 : f32 to vector<1x256xf32>
    %41 = arith.subf %40, %39 : vector<1x256xf32>
    %cst_19 = arith.constant 1.000000e+01 : f32
    %42 = vector.broadcast %cst_19 : f32 to vector<1x256xf32>
    %43 = arith.mulf %41, %42 : vector<1x256xf32>
    %44 = vector.broadcast %37 : vector<1x256xf32> to vector<256x256xf32>
    %45 = arith.mulf %25, %44 : vector<256x256xf32>
    %46 = vector.broadcast %43 : vector<1x256xf32> to vector<256x256xf32>
    %47 = arith.addf %45, %46 : vector<256x256xf32>
    %48 = math.exp %47 : vector<256x256xf32>
    %cst_20 = arith.constant dense<0.000000e+00> : vector<256xf32>
    %49 = vector.multi_reduction <add>, %48, %cst_20 [0] : vector<256x256xf32> to vector<256xf32>
    %50 = vector.shape_cast %49 : vector<256xf32> to vector<1x256xf32>
    %51 = tpu.reciprocal %50 {approx = true} : vector<1x256xf32> -> vector<1x256xf32>
    %52 = vector.broadcast %51 : vector<1x256xf32> to vector<256x256xf32>
    %53 = arith.mulf %48, %52 : vector<256x256xf32>
    %cst_21 = arith.constant dense<0xFF800000> : vector<256xf32>
    %54 = vector.multi_reduction <maximumf>, %53, %cst_21 [1] : vector<256x256xf32> to vector<256xf32>
    %55 = vector.shape_cast %54 : vector<256xf32> to vector<256x1xf32>
    %cst_22 = arith.constant dense<0.000000e+00> : vector<1xf32>
    %56 = vector.multi_reduction <add>, %55, %cst_22 [0] : vector<256x1xf32> to vector<1xf32>
    %57 = vector.shape_cast %56 : vector<1xf32> to vector<1x1xf32>
    %cst_23 = arith.constant 3.906250e-03 : f32
    %58 = vector.broadcast %cst_23 : f32 to vector<1x1xf32>
    %59 = arith.mulf %57, %58 : vector<1x1xf32>
    %60 = math.log %59 : vector<1x1xf32>
    %cst_24 = arith.constant 0.000000e+00 : f32
    %61 = vector.broadcast %cst_24 : f32 to vector<1x1xf32>
    %62 = arith.subf %61, %60 : vector<1x1xf32>
    %63 = vector.shape_cast %62 : vector<1x1xf32> to vector<1x1xf32>
    %64 = vector.broadcast %63 : vector<1x1xf32> to vector<1x128xf32>
    %c0_25 = arith.constant 0 : index
    %c0_26 = arith.constant 0 : index
    %c0_27 = arith.constant 0 : index
    %65 = vector.load %arg4[%c0_25, %c0_26, %c0_27] : memref<1x1x128xf32, #tpu.memory_space<vmem>>, vector<1x1x128xf32>
    %66 = vector.shape_cast %65 : vector<1x1x128xf32> to vector<1x128xf32>
    %67 = vector.shape_cast %64 : vector<1x128xf32> to vector<1x1x128xf32>
    tpu.vector_store %arg4[%c0_25, %c0_26, %c0_27], %67 {strides = array<i32>} : memref<1x1x128xf32, #tpu.memory_space<vmem>>, vector<1x1x128xf32>,
    return
  }
  func.func @transform_0(%arg0: i32) -> (i32, i32) {
    %c0_i32 = arith.constant 0 : i32
    %c0_i32_0 = arith.constant 0 : i32
    %c0_i32_1 = arith.constant 0 : i32
    return %c0_i32, %c0_i32_0 : i32, i32
  }
  func.func @transform_1(%arg0: i32) -> (i32, i32, i32) {
    %c0_i32 = arith.constant 0 : i32
    %c0_i32_0 = arith.constant 0 : i32
    %c0_i32_1 = arith.constant 0 : i32
    return %arg0, %c0_i32, %c0_i32_0 : i32, i32, i32
  }
  func.func @transform_2(%arg0: i32) -> (i32, i32, i32) {
    %c0_i32 = arith.constant 0 : i32
    %c0_i32_0 = arith.constant 0 : i32
    %c0_i32_1 = arith.constant 0 : i32
    return %arg0, %c0_i32, %c0_i32_0 : i32, i32, i32
  }
  func.func @transform_3(%arg0: i32) -> (i32, i32, i32) {
    %c0_i32 = arith.constant 0 : i32
    %c0_i32_0 = arith.constant 0 : i32
    %c0_i32_1 = arith.constant 0 : i32
    return %arg0, %c0_i32, %c0_i32_0 : i32, i32, i32
  }
}

</mosaic_0001>

<bundles_post_ra>
// kernel: cx_loss_forward.1
= control target key start
LH: loop header
LB: loop body
LE: loop exit
PB: predicated region body
PF: predicated region fallthrough
CT: control target
= control target key end

     0   :  { %s1667_s12 = smov 0   ;;  %s2681_s0 = inlined_call_operand.vmem [shape: f32[32,1], index: 0, kind: input, shape index: {}]   ;;  %s2682_s1 = inlined_call_operand.vmem [shape: f32[2,32,256], index: 1, kind: input, shape index: {}]   ;;  %s2683_s2 = inlined_call_operand.vmem [shape: f32[2,32,256], index: 2, kind: input, shape index: {}]   ;;  %s2684_s3 = inlined_call_operand.vmem [shape: f32[2,1,128], index: 3, kind: output, shape index: {}]  }
   0x1 LB: > { %s1422_s13 = sadd.s32 4294967295, %s1643_s12   ;;  %p1426_p0 = scmp.ge.s32.totalorder %s1643_s12, 1  ;;  %s1643_s12 = sphi %s1667_s12, %s13_s12  }
   0x2   : > { %p147_p1 = scmp.lt.s32.totalorder %s1643_s12, 3 }
   0x4   : > { %p148_p2 = pnand %p1426_p0, %p147_p1 }
   0x6   : > { %151 = sbr.rel (%p148_p2) target bundleno = 1030 (0x406), region = 32 }
   0xd   : > { %v189_v0 = vld [vmem:[%s2681_s0 + $0x10] sm:$0xff]  ;;  %v187_v1 = vld [vmem:[%s2681_s0] sm:$0xff]  ;;  %v1645_v2 = vmov 0   ;;  %v190_v3 = vld [vmem:[%s2681_s0 + $0x18] sm:$0xff]  ;;  %v1646_v5 = vmov 0.0   ;;  %p174_p3 = scmp.lt.s32.totalorder %s1422_s13, 1 }
   0xe   : > { %1490 = vset.pattern.permute.xlu1 %v1645_v2  ;;  %1489 = vset.pattern.permute.xlu0 %v1645_v2  ;;  %v188_v4 = vld [vmem:[%s2681_s0 + $0x8] sm:$0xff]  ;;  %vm383_vm0 = vcmask 261120  }
   0xf   : > { %211 = vperm.xlu1 %1490, %v189_v0   ;;  %201 = vperm.xlu0 %1489, %v187_v1   ;;  %s2812_s13 = smov (!%p174_p3, %s1422_s13), 1 }
  0x10   : > { %544 = vmatprep.mubr.f32.mxu0 %v1646_v5  ;;  %640 = vmatprep.mubr.f32.mxu1 %v1646_v5  ;;  %s1465_s22 = sshll.u32 %s2812_s13, 6  ;;  %s186_s4 = scalar_lea.vmem %s2684_s3, %s2812_s13 }
  0x11   : > { %s178_s25 = scalar_lea.vmem %s2682_s1, %s1465_s22  ;;  %s183_s28 = scalar_lea.vmem %s2683_s2, %s1465_s22 }
  0x12   : > { %v191_v6 = vld [vmem:[%s178_s25] sm:$0xff]  ;;  %v192_v7 = vld [vmem:[%s178_s25 + $0x8] sm:$0xff]  ;;  %v197_v18 = vld [vmem:[%s178_s25 + $0x30] sm:$0xff] }
  0x13   : > { %216 = vperm.xlu1 %1490, %v190_v3   ;;  %206 = vperm.xlu0 %1489, %v188_v4   ;;  %v228_v8 = vld [vmem:[%s183_s28 + $0x8] sm:$0xff]  ;;  %v227_v9 = vld [vmem:[%s183_s28] sm:$0xff]  ;;  %v193_v19 = vld [vmem:[%s178_s25 + $0x10] sm:$0xff] }
  0x14   : > { %v195_v11 = vld [vmem:[%s178_s25 + $0x20] sm:$0xff]  ;;  %v196_v13 = vld [vmem:[%s178_s25 + $0x28] sm:$0xff]  ;;  %v194_v22 = vld [vmem:[%s178_s25 + $0x18] sm:$0xff] }
  0x15   : > { %v231_v14 = vld [vmem:[%s183_s28 + $0x20] sm:$0xff]  ;;  %v232_v15 = vld [vmem:[%s183_s28 + $0x28] sm:$0xff]  ;;  %v230_v23 = vld [vmem:[%s183_s28 + $0x18] sm:$0xff] }
  0x16   : > { %v229_v24 = vld [vmem:[%s183_s28 + $0x10] sm:$0xff]  ;;  %v198_v30 = vld [vmem:[%s178_s25 + $0x38] sm:$0xff] }
  0x17   : > { %v233_v31 = vld [vmem:[%s183_s28 + $0x30] sm:$0xff]  ;;  %v234_v32 = vld [vmem:[%s183_s28 + $0x38] sm:$0xff] }
  0x8e   : > { %v212_v10 = vpop.permute.xlu1 %211  ;;  %v202_v12 = vpop.permute.xlu0 %201 }
  0x8f   : > { %v1698_v16 = vsub.f32 %v191_v6, %v202_v12  ;;  %v1700_v17 = vsub.f32 %v192_v7, %v202_v12  ;;  %v1702_v20 = vsub.f32 %v228_v8, %v202_v12  ;;  %v1704_v21 = vsub.f32 %v227_v9, %v202_v12 }
  0x90   : > { %v1706_v25 = vsub.f32 %v195_v11, %v212_v10  ;;  %v1708_v26 = vsub.f32 %v196_v13, %v212_v10  ;;  %v1710_v27 = vsub.f32 %v231_v14, %v212_v10  ;;  %v1712_v28 = vsub.f32 %v232_v15, %v212_v10 }
  0x91   : > { %v243_v34 = vmul.f32 %v1698_v16, %v1698_v16  ;;  %v244_v35 = vmul.f32 %v1700_v17, %v1700_v17  ;;  %v282_v36 = vmul.f32 %v1702_v20, %v1702_v20  ;;  %v281_v37 = vmul.f32 %v1704_v21, %v1704_v21 }
  0x92   : > { %v217_v29 = vpop.permute.xlu1 %216  ;;  %v207_v33 = vpop.permute.xlu0 %206  ;;  %v247_v50 = vmul.f32 %v1706_v25, %v1706_v25  ;;  %v248_v51 = vmul.f32 %v1708_v26, %v1708_v26  ;;  %v285_v52 = vmul.f32 %v1710_v27, %v1710_v27  ;;  %v286_v53 = vmul.f32 %v1712_v28, %v1712_v28 }
  0x93   : > { %v1722_v38 = vsub.f32 %v193_v19, %v207_v33  ;;  %v1724_v39 = vsub.f32 %v194_v22, %v207_v33  ;;  %v1726_v40 = vsub.f32 %v230_v23, %v207_v33  ;;  %v1728_v41 = vsub.f32 %v229_v24, %v207_v33 }
  0x94   : > { %v1730_v42 = vsub.f32 %v197_v18, %v217_v29  ;;  %v1732_v43 = vsub.f32 %v198_v30, %v217_v29  ;;  %v1734_v44 = vsub.f32 %v233_v31, %v217_v29  ;;  %v1736_v45 = vsub.f32 %v234_v32, %v217_v29 }
  0x95   : > { %v245_v46 = vmul.f32 %v1722_v38, %v1722_v38  ;;  %v246_v47 = vmul.f32 %v1724_v39, %v1724_v39  ;;  %v284_v48 = vmul.f32 %v1726_v40, %v1726_v40  ;;  %v283_v49 = vmul.f32 %v1728_v41, %v1728_v41 }
  0x96   : > { %v249_v58 = vmul.f32 %v1730_v42, %v1730_v42  ;;  %v250_v59 = vmul.f32 %v1732_v43, %v1732_v43  ;;  %v287_v60 = vmul.f32 %v1734_v44, %v1734_v44  ;;  %v288_v61 = vmul.f32 %v1736_v45, %v1736_v45 }
  0x97   : > { %v251_v54 = vadd.f32 %v245_v46, %v243_v34  ;;  %v260_v55 = vadd.f32 %v246_v47, %v244_v35  ;;  %v298_v56 = vadd.f32 %v284_v48, %v282_v36  ;;  %v289_v57 = vadd.f32 %v283_v49, %v281_v37 }
  0x99   : > { %v252_v62 = vadd.f32 %v251_v54, %v247_v50  ;;  %v261_v63 = vadd.f32 %v260_v55, %v248_v51  ;;  %v299_v0 = vadd.f32 %v298_v56, %v286_v53  ;;  %v290_v1 = vadd.f32 %v289_v57, %v285_v52 }
  0x9b   : > { %v253_v2 = vadd.f32 %v252_v62, %v249_v58  ;;  %v262_v3 = vadd.f32 %v261_v63, %v250_v59  ;;  %v300_v4 = vadd.f32 %v299_v0, %v288_v61  ;;  %v291_v6 = vadd.f32 %v290_v1, %v287_v60 }
  0x9d   : > { %v254_v7 = vrot.slane %v253_v2, 4  ;;  %v263_v8 = vrot.slane %v262_v3, 4  ;;  %v301_v9 = vrot.slane %v300_v4, 4  ;;  %v292_v10 = vrot.slane %v291_v6, 4 }
  0x9f   : > { %v255_v11 = vadd.f32 %v254_v7, %v253_v2  ;;  %v264_v12 = vadd.f32 %v263_v8, %v262_v3  ;;  %v302_v13 = vadd.f32 %v301_v9, %v300_v4  ;;  %v293_v14 = vadd.f32 %v292_v10, %v291_v6 }
  0xa1   : > { %v256_v15 = vrot.slane %v255_v11, 2  ;;  %v265_v18 = vrot.slane %v264_v12, 2  ;;  %v303_v19 = vrot.slane %v302_v13, 2  ;;  %v294_v22 = vrot.slane %v293_v14, 2 }
  0xa3   : > { %v257_v23 = vadd.f32 %v256_v15, %v255_v11  ;;  %v266_v24 = vadd.f32 %v265_v18, %v264_v12  ;;  %v304_v29 = vadd.f32 %v303_v19, %v302_v13  ;;  %v295_v30 = vadd.f32 %v294_v22, %v293_v14 }
  0xa5   : > { %v258_v31 = vrot.slane %v257_v23, 1  ;;  %v267_v32 = vrot.slane %v266_v24, 1  ;;  %v305_v33 = vrot.slane %v304_v29, 1  ;;  %v296_v34 = vrot.slane %v295_v30, 1 }
  0xa7   : > { %v259_v35 = vadd.f32 %v258_v31, %v257_v23  ;;  %v268_v36 = vadd.f32 %v267_v32, %v266_v24  ;;  %v306_v37 = vadd.f32 %v305_v33, %v304_v29  ;;  %v297_v46 = vadd.f32 %v296_v34, %v295_v30 }
  0xa9   : > { %v269_v47 = vmax.f32 %v259_v35, 1e-12  ;;  %v270_v48 = vmax.f32 %v268_v36, 1e-12  ;;  %v308_v49 = vmax.f32 %v306_v37, 1e-12 }
  0xaa   : > { %v307_v50 = vmax.f32 %v297_v46, 1e-12 }
  0xab   : > { %1491 = vrsqrt.f32 %v269_v47 }
  0xac   : > { %1493 = vrsqrt.f32 %v270_v48 }
  0xad   : > { %1495 = vrsqrt.f32 %v308_v49 }
  0xae   : > { %1497 = vrsqrt.f32 %v307_v50 }
  0xb5   : > { %v1492_v51 = vpop.eup %1491 }
  0xb6   : > { %v1494_v52 = vpop.eup %1493  ;;  %v273_v53 = vmul.f32 %v1492_v51, %v1698_v16 }
  0xb7   : > { %v1496_v54 = vpop.eup %1495  ;;  %v274_v55 = vmul.f32 %v1494_v52, %v1700_v17 }
  0xb8   : > { %v1498_v56 = vpop.eup %1497  ;;  %319 = vxpose.xlu0.b32.start [1/4] (short) %v273_v53, 128  ;;  %v312_v57 = vmul.f32 %v1496_v54, %v1702_v20  ;;  %v314_v58 = vmul.f32 %v1496_v54, %v1726_v40  ;;  %v316_v59 = vmul.f32 %v1496_v54, %v1712_v28  ;;  %v318_v60 = vmul.f32 %v1496_v54, %v1736_v45 }
  0xb9   : > { %351 = vxpose.xlu1.b32.start [1/4] (short) %v274_v55, 128  ;;  %v311_v61 = vmul.f32 %v1498_v56, %v1704_v21  ;;  %v313_v62 = vmul.f32 %v1498_v56, %v1728_v41  ;;  %v315_v0 = vmul.f32 %v1498_v56, %v1710_v27  ;;  %v317_v17 = vmul.f32 %v1498_v56, %v1734_v44 }
  0xba   : > { %v1467_v63 = vpack.c.bf16 %v314_v58, %v312_v57  ;;  %v1471_v20 = vpack.c.bf16 %v318_v60, %v316_v59  ;;  %v276_v28 = vmul.f32 %v1494_v52, %v1724_v39  ;;  %v275_v40 = vmul.f32 %v1492_v51, %v1722_v38 }
  0xbb   : > { %v1469_v16 = vpack.c.bf16 %v313_v62, %v311_v61  ;;  %v1473_v21 = vpack.c.bf16 %v317_v17, %v315_v0  ;;  %v278_v27 = vmul.f32 %v1494_v52, %v1708_v26  ;;  %v277_v41 = vmul.f32 %v1492_v51, %v1706_v25 }
  0xbc   : > { %1468 = vmatprep.subr.bf16.mxu0 %v1467_v63  ;;  %1475 = vmatprep.subr.bf16.mxu1 %v1467_v63  ;;  %v280_v44 = vmul.f32 %v1494_v52, %v1732_v43  ;;  %v279_v45 = vmul.f32 %v1492_v51, %v1730_v42 }
  0xbd   : > { %1470 = vmatpush1.bf16.msra.mxu0 %v1469_v16  ;;  %1477 = vmatpush1.bf16.msra.mxu1 %v1469_v16 }
  0xbe   : > { %1472 = vmatprep.subr.bf16.mxu0 %v1471_v20  ;;  %1476 = vmatprep.subr.bf16.mxu1 %v1471_v20 }
  0xbf   : > { %352 = vxpose.xlu1.b32.cont [2/4] (short) %v276_v28, 128  ;;  %320 = vxpose.xlu0.b32.cont [2/4] (short) %v275_v40, 128 }
  0xc1   : > { %1474 = vmatpush1.bf16.msra.mxu0 %v1473_v21  ;;  %1478 = vmatpush1.bf16.msra.mxu1 %v1473_v21 }
  0xc3   : > { %353 = vxpose.xlu1.b32.cont [3/4] (short) %v278_v27, 128  ;;  %321 = vxpose.xlu0.b32.cont [3/4] (short) %v277_v41, 128 }
  0xc7   : > { %354 = vxpose.xlu1.b32.end [4/4] (short) %v280_v44, 128  ;;  %322 = vxpose.xlu0.b32.end [4/4] (short) %v279_v45, 128 }
 0x13b   : > { %v335_v38 = vpop.trf.xlu0  ;;  %v367_v39 = vpop.trf.xlu1 }
 0x13c   : > { %1431 = vmatmul.mubr.msk.f32.vlgmr.msra.gmra.mrb[0].mxu0 %vm383_vm0, %v335_v38  ;;  %1447 = vmatmul.mubr.msk.f32.vlgmr.msra.gmra.mrb[0].mxu1 %vm383_vm0, %v367_v39 }
 0x13d   : > { %550 = vmatprep.mubr.f32.mxu0 %v1646_v5  ;;  %646 = vmatprep.mubr.f32.mxu1 %v1646_v5 }
 0x13f   : > { %v336_v25 = vpop.trf.xlu0  ;;  %v368_v26 = vpop.trf.xlu1 }
 0x140   : > { %1432 = vmatmul.mubr.msk.f32.gmra.mrb[2].mxu0 %vm383_vm0, %v336_v25  ;;  %1448 = vmatmul.mubr.msk.f32.gmra.mrb[2].mxu1 %vm383_vm0, %v368_v26 }
 0x141   : > { %556 = vmatprep.mubr.f32.mxu0 %v1646_v5  ;;  %652 = vmatprep.mubr.f32.mxu1 %v1646_v5 }
 0x143   : > { %v337_v42 = vpop.trf.xlu0  ;;  %v369_v43 = vpop.trf.xlu1 }
 0x144   : > { %1433 = vmatmul.mubr.msk.f32.gmra.mrb[4].mxu0 %vm383_vm0, %v337_v42  ;;  %1449 = vmatmul.mubr.msk.f32.gmra.mrb[4].mxu1 %vm383_vm0, %v369_v43 }
 0x145   : > { %562 = vmatprep.mubr.f32.mxu0 %v1646_v5  ;;  %658 = vmatprep.mubr.f32.mxu1 %v1646_v5 }
 0x147   : > { %v338_v1 = vpop.trf.xlu0  ;;  %v370_v2 = vpop.trf.xlu1 }
 0x148   : > { %1434 = vmatmul.mubr.msk.f32.gmra.mrb[6].mxu0 %vm383_vm0, %v338_v1  ;;  %1450 = vmatmul.mubr.msk.f32.gmra.mrb[6].mxu1 %vm383_vm0, %v370_v2 }
 0x149   : > { %568 = vmatprep.mubr.f32.mxu0 %v1646_v5  ;;  %664 = vmatprep.mubr.f32.mxu1 %v1646_v5 }
 0x14b   : > { %v339_v3 = vpop.trf.xlu0  ;;  %v371_v4 = vpop.trf.xlu1 }
 0x14c   : > { %1435 = vmatmul.mubr.msk.f32.gmra.mrb[8].mxu0 %vm383_vm0, %v339_v3  ;;  %1451 = vmatmul.mubr.msk.f32.gmra.mrb[8].mxu1 %vm383_vm0, %v371_v4 }
 0x14d   : > { %574 = vmatprep.mubr.f32.mxu0 %v1646_v5  ;;  %670 = vmatprep.mubr.f32.mxu1 %v1646_v5 }
 0x14f   : > { %v340_v6 = vpop.trf.xlu0  ;;  %v372_v7 = vpop.trf.xlu1 }
 0x150   : > { %1436 = vmatmul.mubr.msk.f32.gmra.mrb[10].mxu0 %vm383_vm0, %v340_v6  ;;  %1452 = vmatmul.mubr.msk.f32.gmra.mrb[10].mxu1 %vm383_vm0, %v372_v7 }
 0x151   : > { %580 = vmatprep.mubr.f32.mxu0 %v1646_v5  ;;  %676 = vmatprep.mubr.f32.mxu1 %v1646_v5 }
 0x153   : > { %v341_v8 = vpop.trf.xlu0  ;;  %v373_v9 = vpop.trf.xlu1 }
 0x154   : > { %1437 = vmatmul.mubr.msk.f32.gmra.mrb[12].mxu0 %vm383_vm0, %v341_v8  ;;  %1453 = vmatmul.mubr.msk.f32.gmra.mrb[12].mxu1 %vm383_vm0, %v373_v9 }
 0x155   : > { %586 = vmatprep.mubr.f32.mxu0 %v1646_v5  ;;  %682 = vmatprep.mubr.f32.mxu1 %v1646_v5 }
 0x157   : > { %v342_v10 = vpop.trf.xlu0  ;;  %v374_v11 = vpop.trf.xlu1 }
 0x158   : > { %1438 = vmatmul.mubr.msk.f32.gmra.mrb[14].mxu0 %vm383_vm0, %v342_v10  ;;  %1454 = vmatmul.mubr.msk.f32.gmra.mrb[14].mxu1 %vm383_vm0, %v374_v11 }
 0x159   : > { %592 = vmatprep.mubr.f32.mxu0 %v1646_v5  ;;  %688 = vmatprep.mubr.f32.mxu1 %v1646_v5 }
 0x15b   : > { %v343_v12 = vpop.trf.xlu0  ;;  %v375_v13 = vpop.trf.xlu1 }
 0x15c   : > { %1439 = vmatmul.mubr.msk.f32.gmra.mrb[16].mxu0 %vm383_vm0, %v343_v12  ;;  %1455 = vmatmul.mubr.msk.f32.gmra.mrb[16].mxu1 %vm383_vm0, %v375_v13 }
 0x15d   : > { %598 = vmatprep.mubr.f32.mxu0 %v1646_v5  ;;  %694 = vmatprep.mubr.f32.mxu1 %v1646_v5 }
 0x15f   : > { %v344_v14 = vpop.trf.xlu0  ;;  %v376_v15 = vpop.trf.xlu1 }
 0x160   : > { %1440 = vmatmul.mubr.msk.f32.gmra.mrb[18].mxu0 %vm383_vm0, %v344_v14  ;;  %1456 = vmatmul.mubr.msk.f32.gmra.mrb[18].mxu1 %vm383_vm0, %v376_v15 }
 0x161   : > { %604 = vmatprep.mubr.f32.mxu0 %v1646_v5  ;;  %700 = vmatprep.mubr.f32.mxu1 %v1646_v5 }
 0x163   : > { %v345_v18 = vpop.trf.xlu0  ;;  %v377_v19 = vpop.trf.xlu1 }
 0x164   : > { %1441 = vmatmul.mubr.msk.f32.gmra.mrb[20].mxu0 %vm383_vm0, %v345_v18  ;;  %1457 = vmatmul.mubr.msk.f32.gmra.mrb[20].mxu1 %vm383_vm0, %v377_v19 }
 0x165   : > { %610 = vmatprep.mubr.f32.mxu0 %v1646_v5  ;;  %706 = vmatprep.mubr.f32.mxu1 %v1646_v5 }
 0x167   : > { %v346_v22 = vpop.trf.xlu0  ;;  %v378_v23 = vpop.trf.xlu1 }
 0x168   : > { %1442 = vmatmul.mubr.msk.f32.gmra.mrb[22].mxu0 %vm383_vm0, %v346_v22  ;;  %1458 = vmatmul.mubr.msk.f32.gmra.mrb[22].mxu1 %vm383_vm0, %v378_v23 }
 0x169   : > { %616 = vmatprep.mubr.f32.mxu0 %v1646_v5  ;;  %712 = vmatprep.mubr.f32.mxu1 %v1646_v5 }
 0x16b   : > { %v347_v24 = vpop.trf.xlu0  ;;  %v379_v29 = vpop.trf.xlu1 }
 0x16c   : > { %1443 = vmatmul.mubr.msk.f32.gmra.mrb[24].mxu0 %vm383_vm0, %v347_v24  ;;  %1459 = vmatmul.mubr.msk.f32.gmra.mrb[24].mxu1 %vm383_vm0, %v379_v29 }
 0x16d   : > { %622 = vmatprep.mubr.f32.mxu0 %v1646_v5  ;;  %718 = vmatprep.mubr.f32.mxu1 %v1646_v5 }
 0x16f   : > { %v348_v30 = vpop.trf.xlu0  ;;  %v380_v31 = vpop.trf.xlu1 }
 0x170   : > { %1444 = vmatmul.mubr.msk.f32.gmra.mrb[26].mxu0 %vm383_vm0, %v348_v30  ;;  %1460 = vmatmul.mubr.msk.f32.gmra.mrb[26].mxu1 %vm383_vm0, %v380_v31 }
 0x171   : > { %628 = vmatprep.mubr.f32.mxu0 %v1646_v5  ;;  %724 = vmatprep.mubr.f32.mxu1 %v1646_v5 }
 0x173   : > { %v349_v32 = vpop.trf.xlu0  ;;  %v381_v33 = vpop.trf.xlu1 }
 0x174   : > { %1445 = vmatmul.mubr.msk.f32.gmra.mrb[28].mxu0 %vm383_vm0, %v349_v32  ;;  %1461 = vmatmul.mubr.msk.f32.gmra.mrb[28].mxu1 %vm383_vm0, %v381_v33 }
 0x175   : > { %634 = vmatprep.mubr.f32.mxu0 %v1646_v5  ;;  %730 = vmatprep.mubr.f32.mxu1 %v1646_v5 }
 0x177   : > { %v350_v34 = vpop.trf.xlu0  ;;  %v382_v35 = vpop.trf.xlu1 }
 0x178   : > { %1446 = vmatmul.mubr.msk.f32.gmra.mrb[30].mxu0 %vm383_vm0, %v350_v34  ;;  %1462 = vmatmul.mubr.msk.f32.gmra.mrb[30].mxu1 %vm383_vm0, %v382_v35 }
 0x20f   : > { %v1840_v36 = vpop.f32.mrb[0].mxu0  ;;  %v1842_v37 = vpop.f32.mrb[0].mxu1 }
 0x210   : > { %v1844_v46 = vpop.f32.mrb[1].mxu0  ;;  %v1846_v47 = vpop.f32.mrb[1].mxu1 }
 0x211   : > { %2721 = vst [vmem:[#allocation2_spill] sm:$0xff] %v1846_v47 }
 0x213   : > { %v1848_v48 = vpop.f32.mrb[2].mxu0  ;;  %v1850_v49 = vpop.f32.mrb[2].mxu1 }
 0x214   : > { %v1852_v50 = vpop.f32.mrb[3].mxu0  ;;  %v1854_v5 = vpop.f32.mrb[3].mxu1 }
 0x217   : > { %v1856_v51 = vpop.f32.mrb[4].mxu0  ;;  %v1858_v52 = vpop.f32.mrb[4].mxu1 }
 0x218   : > { %v737_v53 = vmax.f32 %v1840_v36, %v1856_v51  ;;  %v1862_v54 = vpop.f32.mrb[5].mxu0  ;;  %v1864_v55 = vpop.f32.mrb[5].mxu1 }
 0x219   : > { %2722 = vst [vmem:[#allocation3_spill] sm:$0xff] %v1862_v54  ;;  %v774_v56 = vmax.f32 %v1844_v46, %v1862_v54 }
 0x21b   : > { %v1868_v57 = vpop.f32.mrb[6].mxu0  ;;  %v1870_v58 = vpop.f32.mrb[6].mxu1 }
 0x21c   : > { %v738_v59 = vmax.f32 %v1848_v48, %v1868_v57  ;;  %v1874_v60 = vpop.f32.mrb[7].mxu0  ;;  %v1876_v61 = vpop.f32.mrb[7].mxu1 }
 0x21d   : > { %2723 = vst [vmem:[#allocation4_spill] sm:$0xff] %v1874_v60  ;;  %v775_v62 = vmax.f32 %v1852_v50, %v1874_v60 }
 0x21f   : > { %v1880_v63 = vpop.f32.mrb[8].mxu0  ;;  %v1882_v16 = vpop.f32.mrb[8].mxu1 }
 0x220   : > { %v739_v0 = vmax.f32 %v737_v53, %v1880_v63  ;;  %v1885_v17 = vpop.f32.mrb[9].mxu0  ;;  %v1887_v20 = vpop.f32.mrb[9].mxu1 }
 0x221   : > { %2724 = vst [vmem:[#allocation5_spill] sm:$0xff] %v1885_v17  ;;  %v776_v28 = vmax.f32 %v774_v56, %v1885_v17 }
 0x223   : > { %v1890_v40 = vpop.f32.mrb[10].mxu0  ;;  %v1892_v21 = vpop.f32.mrb[10].mxu1 }
 0x224   : > { %v740_v27 = vmax.f32 %v738_v59, %v1890_v40  ;;  %v1895_v41 = vpop.f32.mrb[11].mxu0  ;;  %v1897_v44 = vpop.f32.mrb[11].mxu1 }
 0x225   : > { %2725 = vst [vmem:[#allocation6_spill] sm:$0xff] %v1895_v41  ;;  %2726 = vst [vmem:[#allocation7_spill] sm:$0xff] %v1897_v44  ;;  %v777_v45 = vmax.f32 %v775_v62, %v1895_v41 }
 0x227   : > { %v1900_v38 = vpop.f32.mrb[12].mxu0  ;;  %v1902_v39 = vpop.f32.mrb[12].mxu1 }
 0x228   : > { %v741_v25 = vmax.f32 %v739_v0, %v1900_v38  ;;  %v1905_v26 = vpop.f32.mrb[13].mxu0  ;;  %v1907_v42 = vpop.f32.mrb[13].mxu1 }
 0x229   : > { %2727 = vst [vmem:[#allocation8_spill] sm:$0xff] %v1905_v26  ;;  %2728 = vst [vmem:[#allocation9_spill] sm:$0xff] %v1907_v42  ;;  %v778_v43 = vmax.f32 %v776_v28, %v1905_v26 }
 0x22b   : > { %v1910_v1 = vpop.f32.mrb[14].mxu0  ;;  %v1912_v2 = vpop.f32.mrb[14].mxu1 }
 0x22c   : > { %v742_v3 = vmax.f32 %v740_v27, %v1910_v1  ;;  %v1915_v4 = vpop.f32.mrb[15].mxu0  ;;  %v1917_v6 = vpop.f32.mrb[15].mxu1 }
 0x22d   : > { %2729 = vst [vmem:[#allocation10_spill] sm:$0xff] %v1915_v4  ;;  %2730 = vst [vmem:[#allocation11_spill] sm:$0xff] %v1917_v6  ;;  %v779_v7 = vmax.f32 %v777_v45, %v1915_v4 }
 0x22f   : > { %v1920_v8 = vpop.f32.mrb[16].mxu0  ;;  %v1922_v9 = vpop.f32.mrb[16].mxu1 }
 0x230   : > { %v743_v10 = vmax.f32 %v741_v25, %v1920_v8  ;;  %v1925_v11 = vpop.f32.mrb[17].mxu0  ;;  %v1927_v12 = vpop.f32.mrb[17].mxu1 }
 0x231   : > { %2731 = vst [vmem:[#allocation12_spill] sm:$0xff] %v1925_v11  ;;  %2732 = vst [vmem:[#allocation13_spill] sm:$0xff] %v1927_v12  ;;  %v780_v13 = vmax.f32 %v778_v43, %v1925_v11 }
 0x233   : > { %v1930_v14 = vpop.f32.mrb[18].mxu0  ;;  %v1932_v15 = vpop.f32.mrb[18].mxu1 }
 0x234   : > { %v744_v18 = vmax.f32 %v742_v3, %v1930_v14  ;;  %v1935_v19 = vpop.f32.mrb[19].mxu0  ;;  %v1937_v22 = vpop.f32.mrb[19].mxu1 }
 0x235   : > { %2733 = vst [vmem:[#allocation14_spill] sm:$0xff] %v1935_v19  ;;  %2734 = vst [vmem:[#allocation15_spill] sm:$0xff] %v1937_v22  ;;  %v781_v23 = vmax.f32 %v779_v7, %v1935_v19 }
 0x237   : > { %v1940_v24 = vpop.f32.mrb[20].mxu0  ;;  %v1942_v29 = vpop.f32.mrb[20].mxu1 }
 0x238   : > { %v745_v30 = vmax.f32 %v743_v10, %v1940_v24  ;;  %v1945_v31 = vpop.f32.mrb[21].mxu0  ;;  %v1947_v32 = vpop.f32.mrb[21].mxu1 }
 0x239   : > { %2735 = vst [vmem:[#allocation16_spill] sm:$0xff] %v1945_v31  ;;  %2736 = vst [vmem:[#allocation17_spill] sm:$0xff] %v1947_v32  ;;  %v782_v33 = vmax.f32 %v780_v13, %v1945_v31 }
 0x23b   : > { %v1950_v34 = vpop.f32.mrb[22].mxu0  ;;  %v1952_v35 = vpop.f32.mrb[22].mxu1 }
 0x23c   : > { %v746_v53 = vmax.f32 %v744_v18, %v1950_v34  ;;  %v1955_v56 = vpop.f32.mrb[23].mxu0  ;;  %v1957_v59 = vpop.f32.mrb[23].mxu1 }
 0x23d   : > { %2737 = vst [vmem:[#allocation18_spill] sm:$0xff] %v1955_v56  ;;  %2738 = vst [vmem:[#allocation19_spill] sm:$0xff] %v1957_v59  ;;  %v783_v62 = vmax.f32 %v781_v23, %v1955_v56 }
 0x23f   : > { %v1960_v0 = vpop.f32.mrb[24].mxu0  ;;  %v1962_v28 = vpop.f32.mrb[24].mxu1 }
 0x240   : > { %v747_v27 = vmax.f32 %v745_v30, %v1960_v0  ;;  %v1965_v45 = vpop.f32.mrb[25].mxu0  ;;  %v1967_v25 = vpop.f32.mrb[25].mxu1 }
 0x241   : > { %2739 = vst [vmem:[#allocation20_spill] sm:$0xff] %v1965_v45  ;;  %2740 = vst [vmem:[#allocation21_spill] sm:$0xff] %v1967_v25  ;;  %v784_v43 = vmax.f32 %v782_v33, %v1965_v45 }
 0x243   : > { %v1970_v3 = vpop.f32.mrb[26].mxu0  ;;  %v1972_v7 = vpop.f32.mrb[26].mxu1 }
 0x244   : > { %v748_v10 = vmax.f32 %v746_v53, %v1970_v3  ;;  %v1975_v13 = vpop.f32.mrb[27].mxu0  ;;  %v1977_v18 = vpop.f32.mrb[27].mxu1 }
 0x245   : > { %2741 = vst [vmem:[#allocation22_spill] sm:$0xff] %v1975_v13  ;;  %2742 = vst [vmem:[#allocation23_spill] sm:$0xff] %v1977_v18  ;;  %v785_v23 = vmax.f32 %v783_v62, %v1975_v13 }
 0x247   : > { %v1980_v56 = vpop.f32.mrb[28].mxu0  ;;  %v1982_v30 = vpop.f32.mrb[28].mxu1 }
 0x248   : > { %v749_v31 = vmax.f32 %v747_v27, %v1980_v56  ;;  %v1985_v19 = vpop.f32.mrb[29].mxu0  ;;  %v1987_v33 = vpop.f32.mrb[29].mxu1 }
 0x249   : > { %2743 = vst [vmem:[#allocation24_spill] sm:$0xff] %v1985_v19  ;;  %2744 = vst [vmem:[#allocation25_spill] sm:$0xff] %v1987_v33  ;;  %v786_v45 = vmax.f32 %v784_v43, %v1985_v19 }
 0x24a   : > { %v751_v53 = vmax.f32 %v749_v31, %v1842_v37 }
 0x24b   : > { %v788_v11 = vmax.f32 %v786_v45, %v1846_v47  ;;  %v1992_v4 = vpop.f32.mrb[30].mxu0  ;;  %v1994_v26 = vpop.f32.mrb[30].mxu1 }
 0x24c   : > { %v753_v62 = vmax.f32 %v751_v53, %v1858_v52  ;;  %v750_v13 = vmax.f32 %v748_v10, %v1992_v4  ;;  %v1998_v41 = vpop.f32.mrb[31].mxu0  ;;  %v2000_v27 = vpop.f32.mrb[31].mxu1 }
 0x24d   : > { %v790_v17 = vmax.f32 %v788_v11, %v1864_v55  ;;  %v787_v43 = vmax.f32 %v785_v23, %v1998_v41 }
 0x24e   : > { %v755_v31 = vmax.f32 %v753_v62, %v1882_v16  ;;  %v752_v45 = vmax.f32 %v750_v13, %v1850_v49 }
 0x24f   : > { %v792_v47 = vmax.f32 %v790_v17, %v1887_v20  ;;  %v789_v19 = vmax.f32 %v787_v43, %v1854_v5 }
 0x250   : > { %v754_v53 = vmax.f32 %v752_v45, %v1870_v58  ;;  %v757_v10 = vmax.f32 %v755_v31, %v1902_v39 }
 0x251   : > { %v791_v60 = vmax.f32 %v789_v19, %v1876_v61  ;;  %v794_v54 = vmax.f32 %v792_v47, %v1907_v42 }
 0x252   : > { %v756_v11 = vmax.f32 %v754_v53, %v1892_v21  ;;  %v759_v23 = vmax.f32 %v757_v10, %v1922_v9 }
 0x253   : > { %v793_v62 = vmax.f32 %v791_v60, %v1897_v44  ;;  %v796_v13 = vmax.f32 %v794_v54, %v1927_v12 }
 0x254   : > { %v761_v17 = vmax.f32 %v759_v23, %v1942_v29  ;;  %v758_v43 = vmax.f32 %v756_v11, %v1912_v2 }
 0x255   : > { %v798_v45 = vmax.f32 %v796_v13, %v1947_v32  ;;  %v795_v31 = vmax.f32 %v793_v62, %v1917_v6 }
 0x256   : > { %v763_v19 = vmax.f32 %v761_v17, %v1962_v28  ;;  %v760_v47 = vmax.f32 %v758_v43, %v1932_v15 }
 0x257   : > { %v800_v53 = vmax.f32 %v798_v45, %v1967_v25  ;;  %v797_v10 = vmax.f32 %v795_v31, %v1937_v22 }
 0x258   : > { %v762_v60 = vmax.f32 %v760_v47, %v1952_v35  ;;  %v765_v54 = vmax.f32 %v763_v19, %v1982_v30 }
 0x259   : > { %v799_v23 = vmax.f32 %v797_v10, %v1957_v59  ;;  %v802_v11 = vmax.f32 %v800_v53, %v1987_v33 }
 0x25a   : > { %v764_v13 = vmax.f32 %v762_v60, %v1972_v7 }
 0x25b   : > { %v801_v62 = vmax.f32 %v799_v23, %v1977_v18 }
 0x25c   : > { %v766_v17 = vmax.f32 %v764_v13, %v1994_v26 }
 0x25d   : > { %v803_v43 = vmax.f32 %v801_v62, %v2000_v27 }
 0x25e   : > { %v767_v32 = vmax.f32 %v765_v54, %v766_v17 }
 0x25f   : > { %v804_v45 = vmax.f32 %v802_v11, %v803_v43 }
 0x260   : > { %v768_v25 = vrot.slane %v767_v32, 4 }
 0x261   : > { %v805_v31 = vrot.slane %v804_v45, 4 }
 0x262   : > { %v769_v22 = vmax.f32 %v767_v32, %v768_v25 }
 0x263   : > { %v806_v47 = vmax.f32 %v804_v45, %v805_v31 }
 0x264   : > { %v770_v12 = vrot.slane %v769_v22, 2 }
 0x265   : > { %v807_v19 = vrot.slane %v806_v47, 2 }
 0x266   : > { %v771_v6 = vmax.f32 %v769_v22, %v770_v12 }
 0x267   : > { %v808_v10 = vmax.f32 %v806_v47, %v807_v19 }
 0x268   : > { %v772_v59 = vrot.slane %v771_v6, 1 }
 0x269   : > { %v809_v53 = vrot.slane %v808_v10, 1 }
 0x26a   : > { %v773_v33 = vmax.f32 %v771_v6, %v772_v59 }
 0x26b   : > { %v810_v60 = vmax.f32 %v808_v10, %v809_v53 }
 0x26c   : > { %v811_v42 = vsub.f32 1.0, %v773_v33 }
 0x26d   : > { %v812_v23 = vsub.f32 1.0, %v810_v60 }
 0x26e   : > { %v813_v18 = vmul.f32 0.5, %v811_v42 }
 0x26f   : > { %v814_v13 = vmul.f32 0.5, %v812_v23 }
 0x270   : > { %v815_v44 = vadd.f32 1e-05, %v813_v18 }
 0x271   : > { %v816_v62 = vadd.f32 1e-05, %v814_v13 }
 0x272   : > { %1499 = vrcp.f32 %v815_v44 }
 0x273   : > { %1501 = vrcp.f32 %v816_v62 }
 0x27c   : > { %v1500_v54 = vpop.eup %1499 }
 0x27d   : > { %v2032_v11 = vpop.eup %1501  ;;  %v821_v32 = vmul.f32 5.0, %v1500_v54  ;;  %v823_v25 = vmul.f32 0.5, %v1500_v54 }
 0x27e   : > { %v2035_v12 = vmul.f32 5.0, %v2032_v11 }
 0x27f   : > { %v825_v22 = vsub.f32 1.0, %v823_v25  ;;  %v829_v6 = vmul.f32 %v821_v32, %v1840_v36  ;;  %v831_v59 = vmul.f32 %v821_v32, %v1848_v48  ;;  %v833_v42 = vmul.f32 %v821_v32, %v1856_v51 }
 0x280   : > { %v835_v18 = vmul.f32 %v821_v32, %v1868_v57  ;;  %v837_v44 = vmul.f32 %v821_v32, %v1880_v63  ;;  %v839_v33 = vmul.f32 %v821_v32, %v1890_v40  ;;  %v841_v17 = vmul.f32 %v821_v32, %v1900_v38 }
 0x281   : > { %v827_v43 = vmul.f32 10.0, %v825_v22  ;;  %v843_v45 = vmul.f32 %v821_v32, %v1910_v1  ;;  %v845_v31 = vmul.f32 %v821_v32, %v1920_v8  ;;  %v847_v47 = vmul.f32 %v821_v32, %v1930_v14 }
 0x282   : > { %v849_v36 = vmul.f32 %v821_v32, %v1940_v24  ;;  %v851_v48 = vmul.f32 %v821_v32, %v1950_v34  ;;  %v853_v51 = vmul.f32 %v821_v32, %v1960_v0  ;;  %v855_v57 = vmul.f32 %v821_v32, %v1970_v3 }
 0x283   : > { %v857_v63 = vmul.f32 %v821_v32, %v1980_v56  ;;  %v859_v40 = vmul.f32 %v821_v32, %v1992_v4  ;;  %v861_v38 = vmul.f32 %v821_v32, %v1842_v37  ;;  %v863_v1 = vmul.f32 %v821_v32, %v1850_v49 }
 0x284   : > { %v865_v8 = vmul.f32 %v821_v32, %v1858_v52  ;;  %v867_v14 = vmul.f32 %v821_v32, %v1870_v58  ;;  %v869_v24 = vmul.f32 %v821_v32, %v1882_v16  ;;  %v871_v34 = vmul.f32 %v821_v32, %v1892_v21 }
 0x285   : > { %v873_v0 = vmul.f32 %v821_v32, %v1902_v39  ;;  %v875_v3 = vmul.f32 %v821_v32, %v1912_v2  ;;  %v877_v56 = vmul.f32 %v821_v32, %v1922_v9  ;;  %v879_v4 = vmul.f32 %v821_v32, %v1932_v15 }
 0x286   : > { %v881_v37 = vmul.f32 %v821_v32, %v1942_v29  ;;  %v883_v49 = vmul.f32 %v821_v32, %v1952_v35  ;;  %v885_v52 = vmul.f32 %v821_v32, %v1962_v28  ;;  %v887_v58 = vmul.f32 %v821_v32, %v1972_v7 }
 0x287   : > { %v889_v16 = vmul.f32 %v821_v32, %v1982_v30  ;;  %v891_v21 = vmul.f32 %v821_v32, %v1994_v26  ;;  %v893_v19 = vadd.f32 %v829_v6, %v827_v43  ;;  %v895_v39 = vadd.f32 %v831_v59, %v827_v43 }
 0x288   : > { %v897_v10 = vadd.f32 %v833_v42, %v827_v43  ;;  %v899_v2 = vadd.f32 %v835_v18, %v827_v43  ;;  %v901_v53 = vadd.f32 %v837_v44, %v827_v43  ;;  %v903_v9 = vadd.f32 %v839_v33, %v827_v43 }
 0x289   : > { %v905_v60 = vadd.f32 %v841_v17, %v827_v43  ;;  %v907_v15 = vadd.f32 %v843_v45, %v827_v43  ;;  %v909_v23 = vadd.f32 %v845_v31, %v827_v43  ;;  %v911_v29 = vadd.f32 %v847_v47, %v827_v43 }
 0x28a   : > { %v913_v13 = vadd.f32 %v849_v36, %v827_v43  ;;  %v915_v35 = vadd.f32 %v851_v48, %v827_v43  ;;  %v917_v62 = vadd.f32 %v853_v51, %v827_v43  ;;  %v919_v28 = vadd.f32 %v855_v57, %v827_v43 }
 0x28b   : > { %v2069_v54 = vadd.f32 %v857_v63, %v827_v43  ;;  %v2071_v7 = vadd.f32 %v859_v40, %v827_v43  ;;  %v2073_v30 = vadd.f32 %v861_v38, %v827_v43  ;;  %v2075_v26 = vadd.f32 %v863_v1, %v827_v43 }
 0x28c   : > { %v2077_v32 = vadd.f32 %v865_v8, %v827_v43  ;;  %v2079_v25 = vadd.f32 %v867_v14, %v827_v43  ;;  %v2081_v22 = vadd.f32 %v869_v24, %v827_v43  ;;  %v2083_v6 = vadd.f32 %v871_v34, %v827_v43 }
 0x28d   : > { %v2085_v59 = vadd.f32 %v873_v0, %v827_v43  ;;  %v2087_v42 = vadd.f32 %v875_v3, %v827_v43  ;;  %v2089_v18 = vadd.f32 %v877_v56, %v827_v43  ;;  %v2091_v44 = vadd.f32 %v879_v4, %v827_v43  ;;  %v2746_v3 = vld [vmem:[#allocation3_spill] sm:$0xff] }
 0x28e   : > { %v2093_v33 = vadd.f32 %v881_v37, %v827_v43  ;;  %v2095_v17 = vadd.f32 %v883_v49, %v827_v43  ;;  %v2097_v45 = vadd.f32 %v885_v52, %v827_v43  ;;  %v2099_v31 = vadd.f32 %v887_v58, %v827_v43  ;;  %v2748_v49 = vld [vmem:[#allocation4_spill] sm:$0xff]  ;;  %v2749_v58 = vld [vmem:[#allocation5_spill] sm:$0xff] }
 0x28f   : > { %v2101_v47 = vadd.f32 %v889_v16, %v827_v43  ;;  %v2103_v36 = vadd.f32 %v891_v21, %v827_v43  ;;  %v957_v48 = vmul.f32 1.442695, %v893_v19  ;;  %v961_v51 = vmul.f32 1.442695, %v895_v39  ;;  %v2750_v16 = vld [vmem:[#allocation6_spill] sm:$0xff] }
 0x290   : > { %v965_v57 = vmul.f32 1.442695, %v897_v10  ;;  %v2107_v63 = vmul.f32 %v2035_v12, %v1844_v46  ;;  %v969_v40 = vmul.f32 1.442695, %v899_v2  ;;  %v973_v38 = vmul.f32 1.442695, %v901_v53 }
 0x291   : > { %2745 = vst [vmem:[#allocation26_spill] sm:$0xff] %v2103_v36  ;;  %1503 = vpow2.f32 %v957_v48  ;;  %v977_v1 = vmul.f32 1.442695, %v903_v9  ;;  %v981_v8 = vmul.f32 1.442695, %v905_v60  ;;  %v824_v14 = vmul.f32 0.5, %v2032_v11 }
 0x292   : > { %1505 = vpow2.f32 %v961_v51  ;;  %v985_v43 = vmul.f32 1.442695, %v907_v15  ;;  %v989_v24 = vmul.f32 1.442695, %v909_v23  ;;  %v993_v34 = vmul.f32 1.442695, %v911_v29 }
 0x293   : > { %1507 = vpow2.f32 %v965_v57  ;;  %v997_v0 = vmul.f32 1.442695, %v913_v13  ;;  %v832_v46 = vmul.f32 %v2035_v12, %v1852_v50  ;;  %v834_v56 = vmul.f32 %v2035_v12, %v2746_v3  ;;  %v2752_v50 = vld [vmem:[#allocation8_spill] sm:$0xff]  ;;  %v2753_v2 = vld [vmem:[#allocation10_spill] sm:$0xff] }
 0x294   : > { %1509 = vpow2.f32 %v969_v40  ;;  %v1001_v37 = vmul.f32 1.442695, %v915_v35  ;;  %v836_v52 = vmul.f32 %v2035_v12, %v2748_v49  ;;  %v838_v11 = vmul.f32 %v2035_v12, %v2749_v58  ;;  %v2754_v60 = vld [vmem:[#allocation12_spill] sm:$0xff]  ;;  %v2755_v23 = vld [vmem:[#allocation14_spill] sm:$0xff] }
 0x295   : > { %1511 = vpow2.f32 %v973_v38  ;;  %v840_v21 = vmul.f32 %v2035_v12, %v2750_v16  ;;  %v1005_v39 = vmul.f32 1.442695, %v917_v62  ;;  %v842_v10 = vmul.f32 %v2035_v12, %v2752_v50  ;;  %v2757_v62 = vld [vmem:[#allocation16_spill] sm:$0xff]  ;;  %v2758_v51 = vld [vmem:[#allocation18_spill] sm:$0xff] }
 0x296   : > { %1513 = vpow2.f32 %v977_v1  ;;  %v844_v53 = vmul.f32 %v2035_v12, %v2753_v2  ;;  %v846_v15 = vmul.f32 %v2035_v12, %v2754_v60  ;;  %v848_v29 = vmul.f32 %v2035_v12, %v2755_v23  ;;  %v2759_v40 = vld [vmem:[#allocation20_spill] sm:$0xff]  ;;  %v2763_v50 = vld [vmem:[#allocation2_spill] sm:$0xff] }
 0x297   : > { %1515 = vpow2.f32 %v981_v8  ;;  %v826_v35 = vsub.f32 1.0, %v824_v14  ;;  %v850_v48 = vmul.f32 %v2035_v12, %v2757_v62  ;;  %v852_v57 = vmul.f32 %v2035_v12, %v2758_v51  ;;  %v2761_v49 = vld [vmem:[#allocation24_spill] sm:$0xff]  ;;  %v2765_v51 = vld [vmem:[#allocation7_spill] sm:$0xff] }
 0x298   : > { %1517 = vpow2.f32 %v985_v43  ;;  %v854_v38 = vmul.f32 %v2035_v12, %v2759_v40  ;;  %v1009_v1 = vmul.f32 1.442695, %v919_v28  ;;  %v2760_v43 = vld [vmem:[#allocation22_spill] sm:$0xff]  ;;  %v858_v58 = vmul.f32 %v2035_v12, %v2761_v49  ;;  %v2768_v49 = vld [vmem:[#allocation13_spill] sm:$0xff] }
 0x299   : > { %v856_v3 = vmul.f32 %v2035_v12, %v2760_v43  ;;  %1519 = vpow2.f32 %v989_v24  ;;  %v860_v14 = vmul.f32 %v2035_v12, %v1998_v41  ;;  %v862_v2 = vmul.f32 %v2035_v12, %v2763_v50  ;;  %v2767_v43 = vld [vmem:[#allocation11_spill] sm:$0xff] }
 0x29a   : > { %v864_v28 = vmul.f32 %v2035_v12, %v1854_v5  ;;  %1521 = vpow2.f32 %v993_v34  ;;  %v866_v60 = vmul.f32 %v2035_v12, %v1864_v55  ;;  %v868_v23 = vmul.f32 %v2035_v12, %v1876_v61  ;;  %v2766_v5 = vld [vmem:[#allocation9_spill] sm:$0xff] }
 0x29b   : > { %v2114_v4 = vpop.eup %1503  ;;  %v2162_v24 = vmul.f32 10.0, %v826_v35  ;;  %v870_v41 = vmul.f32 %v2035_v12, %v1887_v20  ;;  %v872_v40 = vmul.f32 %v2035_v12, %v2765_v51  ;;  %v874_v34 = vmul.f32 %v2035_v12, %v2766_v5  ;;  %v2770_v20 = vld [vmem:[#allocation15_spill] sm:$0xff]  ;;  %v2771_v51 = vld [vmem:[#allocation17_spill] sm:$0xff] }
 0x29c   : > { %2747 = vst [vmem:[#allocation3_spill] sm:$0xff] %v2114_v4  ;;  %v2122_v19 = vpop.eup %1505  ;;  %v876_v61 = vmul.f32 %v2035_v12, %v2767_v43  ;;  %v878_v35 = vmul.f32 %v2035_v12, %v2768_v49  ;;  %1523 = vpow2.f32 %v997_v0  ;;  %v2772_v5 = vld [vmem:[#allocation19_spill] sm:$0xff]  ;;  %v2773_v43 = vld [vmem:[#allocation21_spill] sm:$0xff] }
 0x29d   : > { %2751 = vst [vmem:[#allocation4_spill] sm:$0xff] %v2122_v19  ;;  %v1085_v9 = vadd.f32 %v2122_v19, %v2114_v4  ;;  %v2134_v13 = vpop.eup %1507  ;;  %v886_v4 = vmul.f32 %v2035_v12, %v2773_v43  ;;  %v2774_v49 = vld [vmem:[#allocation23_spill] sm:$0xff]  ;;  %1525 = vpow2.f32 %v1001_v37  ;;  %v900_v37 = vadd.f32 %v836_v52, %v2162_v24 }
 0x29e   : > { %2756 = vst [vmem:[#allocation5_spill] sm:$0xff] %v2134_v13  ;;  %v2147_v16 = vpop.eup %1509  ;;  %v888_v19 = vmul.f32 %v2035_v12, %v2774_v49  ;;  %v896_v49 = vadd.f32 %v832_v46, %v2162_v24  ;;  %1527 = vpow2.f32 %v1005_v39  ;;  %v2223_v52 = vadd.f32 %v848_v29, %v2162_v24 }
 0x29f   : > { %v1086_v8 = vadd.f32 %v2134_v13, %v1085_v9  ;;  %2762 = vst [vmem:[#allocation6_spill] sm:$0xff] %v2147_v16  ;;  %v2160_v62 = vpop.eup %1511  ;;  %v882_v13 = vmul.f32 %v2035_v12, %v2771_v51  ;;  %v892_v51 = vmul.f32 %v2035_v12, %v2000_v27  ;;  %v2207_v27 = vadd.f32 %v840_v21, %v2162_v24 }
 0x2a0   : > { %2764 = vst [vmem:[#allocation8_spill] sm:$0xff] %v2160_v62  ;;  %v2176_v50 = vpop.eup %1513  ;;  %1529 = vpow2.f32 %v1009_v1  ;;  %v1029_v21 = vmul.f32 1.442695, %v2077_v32  ;;  %v2242_v29 = vadd.f32 %v858_v58, %v2162_v24  ;;  %v1033_v32 = vmul.f32 1.442695, %v2079_v25 }
 0x2a1   : > { %v1087_v9 = vadd.f32 %v2147_v16, %v1086_v8  ;;  %v1013_v8 = vmul.f32 1.442695, %v2069_v54  ;;  %2769 = vst [vmem:[#allocation10_spill] sm:$0xff] %v2176_v50  ;;  %v880_v16 = vmul.f32 %v2035_v12, %v2770_v20  ;;  %v884_v54 = vmul.f32 %v2035_v12, %v2772_v5  ;;  %v2190_v0 = vpop.eup %1515  ;;  %v2775_v20 = vld [vmem:[#allocation25_spill] sm:$0xff] }
 0x2a2   : > { %v890_v36 = vmul.f32 %v2035_v12, %v2775_v20  ;;  %v2198_v5 = vpop.eup %1517  ;;  %v902_v20 = vadd.f32 %v838_v11, %v2162_v24  ;;  %v1025_v12 = vmul.f32 1.442695, %v2075_v26  ;;  %v2226_v11 = vadd.f32 %v850_v48, %v2162_v24 }
 0x2a3   : > { %v1088_v55 = vadd.f32 %v2160_v62, %v1087_v9  ;;  %v1017_v9 = vmul.f32 1.442695, %v2071_v7  ;;  %v894_v7 = vadd.f32 %v2107_v63, %v2162_v24  ;;  %v2217_v46 = vpop.eup %1519  ;;  %1531 = vpow2.f32 %v1013_v8 }
 0x2a4   : > { %v2228_v26 = vpop.eup %1521  ;;  %v2245_v48 = vadd.f32 %v860_v14, %v2162_v24  ;;  %v2261_v58 = vadd.f32 %v868_v23, %v2162_v24  ;;  %v2264_v14 = vadd.f32 %v870_v41, %v2162_v24  ;;  %v2279_v23 = vadd.f32 %v878_v35, %v2162_v24 }
 0x2a5   : > { %v1089_v62 = vadd.f32 %v2176_v50, %v1088_v55  ;;  %v1021_v55 = vmul.f32 1.442695, %v2073_v30  ;;  %v898_v50 = vadd.f32 %v834_v56, %v2162_v24  ;;  %v2212_v30 = vadd.f32 %v842_v10, %v2162_v24 }
 0x2a6   : > { %v2220_v56 = vadd.f32 %v846_v15, %v2162_v24  ;;  %v2233_v10 = vadd.f32 %v852_v57, %v2162_v24  ;;  %v2239_v15 = vadd.f32 %v856_v3, %v2162_v24  ;;  %v2250_v57 = vadd.f32 %v862_v2, %v2162_v24  ;;  %v2255_v8 = vpop.eup %1523 }
 0x2a7   : > { %v1090_v43 = vadd.f32 %v2190_v0, %v1089_v62  ;;  %v2215_v62 = vadd.f32 %v844_v53, %v2162_v24  ;;  %v2236_v53 = vadd.f32 %v854_v38, %v2162_v24  ;;  %v2253_v38 = vadd.f32 %v864_v28, %v2162_v24 }
 0x2a8   : > { %1533 = vpow2.f32 %v1017_v9  ;;  %v2258_v3 = vadd.f32 %v866_v60, %v2162_v24  ;;  %v2268_v2 = vadd.f32 %v872_v40, %v2162_v24  ;;  %v2271_v28 = vadd.f32 %v874_v34, %v2162_v24 }
 0x2a9   : > { %v1091_v63 = vadd.f32 %v2198_v5, %v1090_v43  ;;  %1535 = vpow2.f32 %v1021_v55  ;;  %v2273_v43 = vpop.eup %1525  ;;  %v2276_v60 = vadd.f32 %v876_v61, %v2162_v24  ;;  %v2282_v41 = vadd.f32 %v880_v16, %v2162_v24 }
 0x2aa   : > { %1537 = vpow2.f32 %v1025_v12  ;;  %v2286_v40 = vadd.f32 %v882_v13, %v2162_v24  ;;  %v2289_v34 = vadd.f32 %v884_v54, %v2162_v24  ;;  %v2292_v55 = vadd.f32 %v886_v4, %v2162_v24  ;;  %v2294_v12 = vpop.eup %1527 }
 0x2ab   : > { %v1092_v39 = vadd.f32 %v2217_v46, %v1091_v63  ;;  %v2297_v61 = vadd.f32 %v888_v19, %v2162_v24  ;;  %v2300_v35 = vadd.f32 %v890_v36, %v2162_v24  ;;  %v2303_v16 = vadd.f32 %v892_v51, %v2162_v24 }
 0x2ac   : > { %v959_v63 = vmul.f32 1.442695, %v894_v7  ;;  %1539 = vpow2.f32 %v1029_v21  ;;  %v963_v54 = vmul.f32 1.442695, %v896_v49  ;;  %v1037_v4 = vmul.f32 1.442695, %v2081_v22 }
 0x2ad   : > { %v1093_v1 = vadd.f32 %v2228_v26, %v1092_v39  ;;  %v967_v39 = vmul.f32 1.442695, %v898_v50  ;;  %v1041_v24 = vmul.f32 1.442695, %v2083_v6  ;;  %v975_v7 = vmul.f32 1.442695, %v902_v20 }
 0x2ae   : > { %1541 = vpow2.f32 %v959_v63  ;;  %v1045_v50 = vmul.f32 1.442695, %v2085_v59  ;;  %v1049_v6 = vmul.f32 1.442695, %v2087_v42  ;;  %v983_v20 = vmul.f32 1.442695, %v2212_v30 }
 0x2af   : > { %v1094_v25 = vadd.f32 %v2255_v8, %v1093_v1  ;;  %v2306_v1 = vpop.eup %1529  ;;  %1543 = vpow2.f32 %v963_v54  ;;  %v1053_v59 = vmul.f32 1.442695, %v2089_v18  ;;  %v1057_v42 = vmul.f32 1.442695, %v2091_v44 }
 0x2b0   : > { %v2310_v36 = vpop.eup %1531  ;;  %1545 = vpow2.f32 %v1033_v32  ;;  %v991_v30 = vmul.f32 1.442695, %v2220_v56  ;;  %v995_v44 = vmul.f32 1.442695, %v2223_v52  ;;  %v1065_v56 = vmul.f32 1.442695, %v2095_v17 }
 0x2b1   : > { %v1095_v9 = vadd.f32 %v2273_v43, %v1094_v25  ;;  %v971_v25 = vmul.f32 1.442695, %v900_v37  ;;  %1547 = vpow2.f32 %v967_v39  ;;  %v979_v37 = vmul.f32 1.442695, %v2207_v27 }
 0x2b2   : > { %v2314_v49 = vpop.eup %1533  ;;  %1549 = vpow2.f32 %v1037_v4  ;;  %v987_v27 = vmul.f32 1.442695, %v2215_v62 }
 0x2b3   : > { %v1096_v13 = vadd.f32 %v2294_v12, %v1095_v9  ;;  %v2317_v22 = vpop.eup %1535  ;;  %1551 = vpow2.f32 %v971_v25 }
 0x2b4   : > { %v2321_v9 = vpop.eup %1537  ;;  %1553 = vpow2.f32 %v1041_v24 }
 0x2b5   : > { %v1097_v19 = vadd.f32 %v2306_v1, %v1096_v13  ;;  %1555 = vpow2.f32 %v975_v7 }
 0x2b6   : > { %1557 = vpow2.f32 %v1045_v50  ;;  %v2327_v63 = vpop.eup %1539 }
 0x2b7   : > { %v1098_v51 = vadd.f32 %v2310_v36, %v1097_v19  ;;  %1559 = vpow2.f32 %v979_v37  ;;  %v1061_v19 = vmul.f32 1.442695, %v2093_v33 }
 0x2b8   : > { %v2331_v54 = vpop.eup %1541  ;;  %1561 = vpow2.f32 %v1049_v6  ;;  %v1069_v6 = vmul.f32 1.442695, %v2097_v45 }
 0x2b9   : > { %v1099_v21 = vadd.f32 %v2314_v49, %v1098_v51  ;;  %v2334_v39 = vpop.eup %1543  ;;  %1563 = vpow2.f32 %v983_v20  ;;  %v1003_v20 = vmul.f32 1.442695, %v2233_v10 }
 0x2ba   : > { %v2338_v18 = vpop.eup %1545  ;;  %1565 = vpow2.f32 %v1053_v59  ;;  %v1122_v62 = vadd.f32 %v2334_v39, %v2331_v54 }
 0x2bb   : > { %v1100_v32 = vadd.f32 %v2317_v22, %v1099_v21  ;;  %v2343_v25 = vpop.eup %1547  ;;  %1567 = vpow2.f32 %v987_v27  ;;  %v999_v21 = vmul.f32 1.442695, %v2226_v11 }
 0x2bc   : > { %v2347_v51 = vpop.eup %1549  ;;  %1569 = vpow2.f32 %v1057_v42  ;;  %v1123_v7 = vadd.f32 %v2343_v25, %v1122_v62  ;;  %v1007_v42 = vmul.f32 1.442695, %v2236_v53  ;;  %v1011_v62 = vmul.f32 1.442695, %v2239_v15 }
 0x2bd   : > { %v1101_v13 = vadd.f32 %v2321_v9, %v1100_v32  ;;  %v2351_v50 = vpop.eup %1551  ;;  %1571 = vpow2.f32 %v991_v30  ;;  %v1077_v30 = vmul.f32 1.442695, %v2101_v47 }
 0x2be   : > { %v2355_v37 = vpop.eup %1553  ;;  %1573 = vpow2.f32 %v1061_v19  ;;  %v1124_v52 = vadd.f32 %v2351_v50, %v1123_v7 }
 0x2bf   : > { %v1102_v4 = vadd.f32 %v2327_v63, %v1101_v13  ;;  %v2359_v32 = vpop.eup %1555  ;;  %1575 = vpow2.f32 %v995_v44  ;;  %v1073_v13 = vmul.f32 1.442695, %v2099_v31  ;;  %v2776_v44 = vld [vmem:[#allocation26_spill] sm:$0xff] }
 0x2c0   : > { %v2363_v59 = vpop.eup %1557  ;;  %1577 = vpow2.f32 %v1065_v56  ;;  %v1125_v11 = vadd.f32 %v2359_v32, %v1124_v52  ;;  %v1081_v56 = vmul.f32 1.442695, %v2776_v44 }
 0x2c1   : > { %v1103_v24 = vadd.f32 %v2338_v18, %v1102_v4  ;;  %v2367_v27 = vpop.eup %1559  ;;  %1579 = vpow2.f32 %v999_v21 }
 0x2c2   : > { %v2371_v4 = vpop.eup %1561  ;;  %1581 = vpow2.f32 %v1069_v6  ;;  %v1126_v10 = vadd.f32 %v2367_v27, %v1125_v11 }
 0x2c3   : > { %v1104_v33 = vadd.f32 %v2347_v51, %v1103_v24  ;;  %v2375_v19 = vpop.eup %1563  ;;  %1583 = vpow2.f32 %v1003_v20 }
 0x2c4   : > { %v2379_v24 = vpop.eup %1565  ;;  %1585 = vpow2.f32 %v1073_v13  ;;  %v1127_v53 = vadd.f32 %v2375_v19, %v1126_v10 }
 0x2c5   : > { %v1105_v17 = vadd.f32 %v2355_v37, %v1104_v33  ;;  %v2383_v7 = vpop.eup %1567  ;;  %1587 = vpow2.f32 %v1007_v42  ;;  %v1015_v33 = vmul.f32 1.442695, %v2242_v29 }
 0x2c6   : > { %v2387_v21 = vpop.eup %1569  ;;  %1589 = vpow2.f32 %v1077_v30  ;;  %v1128_v6 = vadd.f32 %v2383_v7, %v1127_v53 }
 0x2c7   : > { %v1106_v45 = vadd.f32 %v2363_v59, %v1105_v17  ;;  %v2390_v15 = vpop.eup %1571  ;;  %1591 = vpow2.f32 %v1011_v62  ;;  %v1019_v17 = vmul.f32 1.442695, %v2245_v48 }
 0x2c8   : > { %v2394_v20 = vpop.eup %1573  ;;  %1593 = vpow2.f32 %v1081_v56  ;;  %v1129_v13 = vadd.f32 %v2390_v15, %v1128_v6 }
 0x2c9   : > { %v1107_v31 = vadd.f32 %v2371_v4, %v1106_v45  ;;  %v2397_v11 = vpop.eup %1575  ;;  %1595 = vpow2.f32 %v1015_v33  ;;  %v1023_v45 = vmul.f32 1.442695, %v2250_v57  ;;  %v1031_v57 = vmul.f32 1.442695, %v2258_v3 }
 0x2ca   : > { %v2401_v42 = vpop.eup %1577  ;;  %v1130_v30 = vadd.f32 %v2397_v11, %v1129_v13  ;;  %1597 = vpow2.f32 %v1019_v17  ;;  %v1039_v3 = vmul.f32 1.442695, %v2264_v14 }
 0x2cb   : > { %v1108_v47 = vadd.f32 %v2379_v24, %v1107_v31  ;;  %v2404_v10 = vpop.eup %1579  ;;  %v1027_v31 = vmul.f32 1.442695, %v2253_v38  ;;  %1599 = vpow2.f32 %v1023_v45  ;;  %v1035_v38 = vmul.f32 1.442695, %v2261_v58 }
 0x2cc   : > { %v2408_v62 = vpop.eup %1581  ;;  %v1131_v44 = vadd.f32 %v2404_v10, %v1130_v30  ;;  %v1043_v58 = vmul.f32 1.442695, %v2268_v2 }
 0x2cd   : > { %v1109_v52 = vadd.f32 %v2387_v21, %v1108_v47  ;;  %v2411_v56 = vpop.eup %1583  ;;  %1601 = vpow2.f32 %v1027_v31 }
 0x2ce   : > { %2777 = vst [vmem:[#allocation12_spill] sm:$0xff] %v2411_v56  ;;  %v2415_v47 = vpop.eup %1585  ;;  %v1132_v33 = vadd.f32 %v2411_v56, %v1131_v44  ;;  %1603 = vpow2.f32 %v1031_v57  ;;  %v1047_v57 = vmul.f32 1.442695, %v2271_v28 }
 0x2cf   : > { %v1110_v29 = vadd.f32 %v2394_v20, %v1109_v52  ;;  %v2418_v6 = vpop.eup %1587  ;;  %1605 = vpow2.f32 %v1035_v38 }
 0x2d0   : > { %v2422_v17 = vpop.eup %1589  ;;  %v1133_v13 = vadd.f32 %v2418_v6, %v1132_v33  ;;  %1607 = vpow2.f32 %v1039_v3 }
 0x2d1   : > { %v1111_v48 = vadd.f32 %v2401_v42, %v1110_v29  ;;  %v2425_v29 = vpop.eup %1591  ;;  %1609 = vpow2.f32 %v1043_v58  ;;  %v1063_v58 = vmul.f32 1.442695, %v2286_v40  ;;  %v1075_v40 = vmul.f32 1.442695, %v2297_v61 }
 0x2d2   : > { %2778 = vst [vmem:[#allocation14_spill] sm:$0xff] %v2425_v29  ;;  %v2429_v30 = vpop.eup %1593  ;;  %1611 = vpow2.f32 %v1047_v57 }
 0x2d3   : > { %v1112_v53 = vadd.f32 %v2408_v62, %v1111_v48  ;;  %v1134_v48 = vadd.f32 %v2425_v29, %v1133_v13  ;;  %v2432_v44 = vpop.eup %1595  ;;  %v1051_v29 = vmul.f32 1.442695, %v2276_v60 }
 0x2d4   : > { %2779 = vst [vmem:[#allocation16_spill] sm:$0xff] %v2432_v44  ;;  %v2437_v33 = vpop.eup %1597 }
 0x2d5   : > { %v1113_v52 = vadd.f32 %v2415_v47, %v1112_v53  ;;  %v1135_v53 = vadd.f32 %v2432_v44, %v1134_v48  ;;  %v1055_v48 = vmul.f32 1.442695, %v2279_v23  ;;  %1613 = vpow2.f32 %v1051_v29 }
 0x2d7   : > { %v1114_v45 = vadd.f32 %v2422_v17, %v1113_v52  ;;  %v1136_v14 = vadd.f32 %v2437_v33, %v1135_v53  ;;  %v2441_v52 = vpop.eup %1599  ;;  %v1059_v53 = vmul.f32 1.442695, %v2282_v41  ;;  %1615 = vpow2.f32 %v1055_v48 }
 0x2d8   : > { %v1071_v41 = vmul.f32 1.442695, %v2292_v55  ;;  %v1083_v55 = vmul.f32 1.442695, %v2303_v16 }
 0x2d9   : > { %v1115_v31 = vadd.f32 %v2429_v30, %v1114_v45  ;;  %v1137_v38 = vadd.f32 %v2441_v52, %v1136_v14  ;;  %v2445_v45 = vpop.eup %1601  ;;  %1617 = vpow2.f32 %v1059_v53 }
 0x2da   : > { %v2449_v44 = vpop.eup %1603  ;;  %1619 = vpow2.f32 %v1063_v58 }
 0x2db   : > { %v1116_v56 = vrot.slane %v1115_v31, 4  ;;  %v1138_v3 = vadd.f32 %v2445_v45, %v1137_v38  ;;  %v1067_v38 = vmul.f32 1.442695, %v2289_v34  ;;  %v1079_v34 = vmul.f32 1.442695, %v2300_v35 }
 0x2dd   : > { %v1117_v13 = vadd.f32 %v1116_v56, %v1115_v31  ;;  %v1139_v56 = vadd.f32 %v2449_v44, %v1138_v3  ;;  %v2453_v31 = vpop.eup %1605 }
 0x2de   : > { %v2457_v14 = vpop.eup %1607 }
 0x2df   : > { %v1118_v2 = vrot.slane %v1117_v13, 2  ;;  %v1140_v57 = vadd.f32 %v2453_v31, %v1139_v56 }
 0x2e1   : > { %v1119_v28 = vadd.f32 %v1118_v2, %v1117_v13  ;;  %v1141_v29 = vadd.f32 %v2457_v14, %v1140_v57  ;;  %v2461_v13 = vpop.eup %1609 }
 0x2e2   : > { %v2465_v48 = vpop.eup %1611 }
 0x2e3   : > { %v1120_v60 = vrot.slane %v1119_v28, 1  ;;  %v1142_v2 = vadd.f32 %v2461_v13, %v1141_v29 }
 0x2e5   : > { %v1121_v23 = vadd.f32 %v1120_v60, %v1119_v28  ;;  %v1143_v3 = vadd.f32 %v2465_v48, %v1142_v2  ;;  %v2469_v28 = vpop.eup %1613 }
 0x2e6   : > { %v2473_v56 = vpop.eup %1615 }
 0x2e7   : > { %1621 = vrcp.f32 %v1121_v23  ;;  %v1144_v53 = vadd.f32 %v2469_v28, %v1143_v3  ;;  %v2477_v58 = vpop.eup %1617 }
 0x2e8   : > { %1623 = vpow2.f32 %v1067_v38  ;;  %v2480_v57 = vpop.eup %1619 }
 0x2e9   : > { %1625 = vpow2.f32 %v1071_v41  ;;  %v1145_v60 = vadd.f32 %v2473_v56, %v1144_v53 }
 0x2ea   : > { %1627 = vpow2.f32 %v1075_v40 }
 0x2eb   : > { %1629 = vpow2.f32 %v1079_v34  ;;  %v1146_v61 = vadd.f32 %v2477_v58, %v1145_v60 }
 0x2ec   : > { %1631 = vpow2.f32 %v1083_v55 }
 0x2ed   : > { %v1147_v35 = vadd.f32 %v2480_v57, %v1146_v61 }
 0x2f1   : > { %v1622_v23 = vpop.eup %1621 }
 0x2f2   : > { %v2483_v38 = vpop.eup %1623  ;;  %v2489_v16 = vmul.f32 %v1622_v23, %v2310_v36  ;;  %v2493_v40 = vmul.f32 %v1622_v23, %v2317_v22  ;;  %v2496_v3 = vmul.f32 %v1622_v23, %v2327_v63  ;;  %v2501_v53 = vmul.f32 %v1622_v23, %v2314_v49 }
 0x2f3   : > { %2780 = vst [vmem:[#allocation18_spill] sm:$0xff] %v2483_v38  ;;  %v1148_v29 = vadd.f32 %v2483_v38, %v1147_v35  ;;  %v2486_v41 = vpop.eup %1625  ;;  %v2504_v55 = vmul.f32 %v1622_v23, %v2347_v51  ;;  %v2507_v60 = vmul.f32 %v1622_v23, %v2321_v9  ;;  %v2510_v36 = vmul.f32 %v1622_v23, %v2363_v59  ;;  %v2794_v38 = vld [vmem:[#allocation5_spill] sm:$0xff] }
 0x2f4   : > { %v2498_v34 = vpop.eup %1627  ;;  %v2514_v61 = vmul.f32 %v1622_v23, %v2338_v18  ;;  %v2517_v63 = vmul.f32 %v1622_v23, %v2379_v24  ;;  %v2520_v49 = vmul.f32 %v1622_v23, %v2355_v37  ;;  %v2525_v51 = vmul.f32 %v1622_v23, %v2394_v20 }
 0x2f5   : > { %v1149_v2 = vadd.f32 %v2486_v41, %v1148_v29  ;;  %2781 = vst [vmem:[#allocation20_spill] sm:$0xff] %v2498_v34  ;;  %v2522_v35 = vpop.eup %1629  ;;  %v2528_v9 = vmul.f32 %v1622_v23, %v2371_v4  ;;  %v2531_v59 = vmul.f32 %v1622_v23, %v2408_v62  ;;  %v2534_v18 = vmul.f32 %v1622_v23, %v2387_v21 }
 0x2f6   : > { %2782 = vst [vmem:[#allocation22_spill] sm:$0xff] %v2522_v35  ;;  %2783 = vst [vmem:[#allocation24_spill] sm:$0xff] %v2525_v51  ;;  %v2538_v29 = vmul.f32 %v1622_v23, %v2422_v17  ;;  %v2541_v37 = vmul.f32 %v1622_v23, %v2401_v42  ;;  %v2544_v20 = vmul.f32 %v1622_v23, %v2415_v47  ;;  %v2793_v47 = vld [vmem:[#allocation8_spill] sm:$0xff] }
 0x2f7   : > { %v1150_v22 = vadd.f32 %v2498_v34, %v1149_v2  ;;  %2784 = vst [vmem:[#allocation2_spill] sm:$0xff] %v2528_v9  ;;  %2785 = vst [vmem:[#allocation7_spill] sm:$0xff] %v2531_v59  ;;  %v2546_v2 = vpop.eup %1631  ;;  %v2549_v4 = vmul.f32 %v1622_v23, %v2429_v30  ;;  %v1165_v51 = vmul.f32 %v1622_v23, %v2794_v38 }
 0x2f8   : > { %2786 = vst [vmem:[#allocation9_spill] sm:$0xff] %v2534_v18  ;;  %2787 = vst [vmem:[#allocation11_spill] sm:$0xff] %v2538_v29  ;;  %v2791_v29 = vld [vmem:[#allocation4_spill] sm:$0xff]  ;;  %v1173_v30 = vmul.f32 %v1622_v23, %v2190_v0  ;;  %v2573_v38 = vmul.f32 %v1622_v23, %v2294_v12  ;;  %v2576_v0 = vmul.f32 %v1622_v23, %v2228_v26 }
 0x2f9   : > { %v1151_v24 = vadd.f32 %v2522_v35, %v1150_v22  ;;  %2788 = vst [vmem:[#allocation13_spill] sm:$0xff] %v2541_v37  ;;  %2789 = vst [vmem:[#allocation15_spill] sm:$0xff] %v2544_v20  ;;  %v1163_v42 = vmul.f32 %v1622_v23, %v2791_v29  ;;  %v2792_v37 = vld [vmem:[#allocation3_spill] sm:$0xff]  ;;  %v1169_v20 = vmul.f32 %v1622_v23, %v2793_v47 }
 0x2fa   : > { %2790 = vst [vmem:[#allocation17_spill] sm:$0xff] %v2549_v4  ;;  %v1161_v34 = vmul.f32 %v1622_v23, %v2792_v37  ;;  %v2795_v4 = vld [vmem:[#allocation6_spill] sm:$0xff]  ;;  %v2582_v37 = vmul.f32 %v1622_v23, %v2306_v1 }
 0x2fb   : > { %v1152_v62 = vadd.f32 %v2546_v2, %v1151_v24  ;;  %v1167_v35 = vmul.f32 %v1622_v23, %v2795_v4  ;;  %v2559_v24 = vmul.f32 %v1622_v23, %v2217_v46  ;;  %v2579_v46 = vmul.f32 %v1622_v23, %v2273_v43 }
 0x2fd   : > { %v1153_v21 = vrot.slane %v1152_v62, 4 }
 0x2ff   : > { %v1154_v18 = vadd.f32 %v1153_v21, %v1152_v62  ;;  %v2796_v62 = vld [vmem:[#allocation10_spill] sm:$0xff] }
 0x301   : > { %v1155_v59 = vrot.slane %v1154_v18, 2 }
 0x303   : > { %v1156_v22 = vadd.f32 %v1155_v59, %v1154_v18  ;;  %v2562_v59 = vmul.f32 %v1622_v23, %v2796_v62  ;;  %v2568_v18 = vmul.f32 %v1622_v23, %v2198_v5 }
 0x305   : > { %v1157_v9 = vrot.slane %v1156_v22, 1 }
 0x307   : > { %v1158_v17 = vadd.f32 %v1157_v9, %v1156_v22  ;;  %v2565_v9 = vmul.f32 %v1622_v23, %v2255_v8 }
 0x309   : > { %1633 = vrcp.f32 %v1158_v17 }
 0x313   : > { %v2570_v29 = vpop.eup %1633 }
 0x314   : > { %v1164_v8 = vmul.f32 %v2570_v29, %v2334_v39  ;;  %v1162_v5 = vmul.f32 %v2570_v29, %v2331_v54  ;;  %v1170_v4 = vmul.f32 %v2570_v29, %v2359_v32  ;;  %v1166_v12 = vmul.f32 %v2570_v29, %v2343_v25 }
 0x315   : > { %v1174_v26 = vmul.f32 %v2570_v29, %v2375_v19  ;;  %v1168_v43 = vmul.f32 %v2570_v29, %v2351_v50  ;;  %v1178_v1 = vmul.f32 %v2570_v29, %v2390_v15  ;;  %v1172_v39 = vmul.f32 %v2570_v29, %v2367_v27 }
 0x316   : > { %v1228_v23 = vmax.f32 %v1163_v42, %v1164_v8  ;;  %v1225_v54 = vmax.f32 %v1161_v34, %v1162_v5  ;;  %v1237_v21 = vmax.f32 %v1169_v20, %v1170_v4  ;;  %v1231_v22 = vmax.f32 %v1165_v51, %v1166_v12  ;;  %v2797_v34 = vld [vmem:[#allocation16_spill] sm:$0xff] }
 0x317   : > { %v1243_v32 = vmax.f32 %v1173_v30, %v1174_v26  ;;  %v1234_v17 = vmax.f32 %v1167_v35, %v1168_v43  ;;  %v1249_v25 = vmax.f32 %v2559_v24, %v1178_v1  ;;  %v1240_v47 = vmax.f32 %v2562_v59, %v1172_v39  ;;  %v2798_v51 = vld [vmem:[#allocation12_spill] sm:$0xff]  ;;  %v2799_v24 = vld [vmem:[#allocation14_spill] sm:$0xff]  ;;  %v2806_v39 = vld [vmem:[#allocation9_spill] sm:$0xff] }
 0x318   : > { %1229 = vmax.xlane.f32.xlu1 %v1228_v23  ;;  %1226 = vmax.xlane.f32.xlu0 %v1225_v54  ;;  %v1182_v50 = vmul.f32 %v2570_v29, %v2404_v10  ;;  %v1176_v19 = vmul.f32 %v2570_v29, %v2383_v7  ;;  %v1186_v27 = vmul.f32 %v2570_v29, %v2418_v6  ;;  %v2803_v12 = vld [vmem:[#allocation20_spill] sm:$0xff]  ;;  %v2804_v26 = vld [vmem:[#allocation2_spill] sm:$0xff]  ;;  %v2807_v23 = vld [vmem:[#allocation11_spill] sm:$0xff] }
 0x319   : > { %v1180_v15 = vmul.f32 %v2570_v29, %v2397_v11  ;;  %v1190_v35 = vmul.f32 %v2570_v29, %v2797_v34  ;;  %v1184_v20 = vmul.f32 %v2570_v29, %v2798_v51  ;;  %v1194_v42 = vmul.f32 %v2570_v29, %v2441_v52 }
 0x31a   : > { %v1255_v10 = vmax.f32 %v2565_v9, %v1182_v50  ;;  %v1246_v30 = vmax.f32 %v2568_v18, %v1176_v19  ;;  %v1261_v7 = vmax.f32 %v2573_v38, %v1186_v27  ;;  %v1188_v6 = vmul.f32 %v2570_v29, %v2799_v24  ;;  %v2810_v50 = vld [vmem:[#allocation17_spill] sm:$0xff] }
 0x31b   : > { %v1252_v11 = vmax.f32 %v2576_v0, %v1180_v15  ;;  %v1267_v62 = vmax.f32 %v2489_v16, %v1190_v35  ;;  %v1258_v59 = vmax.f32 %v2579_v46, %v1184_v20  ;;  %v1273_v8 = vmax.f32 %v2493_v40, %v1194_v42 }
 0x31c   : > { %1238 = vmax.xlane.f32.xlu1 %v1237_v21  ;;  %1232 = vmax.xlane.f32.xlu0 %v1231_v22  ;;  %v1264_v52 = vmax.f32 %v2582_v37, %v1188_v6  ;;  %v1198_v9 = vmul.f32 %v2570_v29, %v2449_v44  ;;  %v1192_v18 = vmul.f32 %v2570_v29, %v2437_v33  ;;  %v2808_v21 = vld [vmem:[#allocation13_spill] sm:$0xff] }
 0x31d   : > { %v1202_v38 = vmul.f32 %v2570_v29, %v2457_v14  ;;  %v1196_v16 = vmul.f32 %v2570_v29, %v2445_v45  ;;  %v1206_v0 = vmul.f32 %v2570_v29, %v2465_v48  ;;  %v1200_v40 = vmul.f32 %v2570_v29, %v2453_v31 }
 0x31e   : > { %v1279_v46 = vmax.f32 %v2496_v3, %v1198_v9  ;;  %v1270_v37 = vmax.f32 %v2501_v53, %v1192_v18  ;;  %v1210_v44 = vmul.f32 %v2570_v29, %v2473_v56  ;;  %v1204_v33 = vmul.f32 %v2570_v29, %v2461_v13 }
 0x31f   : > { %v1285_v14 = vmax.f32 %v2504_v55, %v1202_v38  ;;  %v1276_v45 = vmax.f32 %v2507_v60, %v1196_v16  ;;  %v1291_v5 = vmax.f32 %v2510_v36, %v1206_v0  ;;  %v1282_v48 = vmax.f32 %v2514_v61, %v1200_v40  ;;  %v2800_v60 = vld [vmem:[#allocation22_spill] sm:$0xff]  ;;  %v2801_v61 = vld [vmem:[#allocation24_spill] sm:$0xff] }
 0x320   : > { %1244 = vmax.xlane.f32.xlu1 %v1243_v32  ;;  %1235 = vmax.xlane.f32.xlu0 %v1234_v17  ;;  %v1297_v31 = vmax.f32 %v2517_v63, %v1210_v44  ;;  %v1288_v3 = vmax.f32 %v2520_v49, %v1204_v33  ;;  %v1214_v56 = vmul.f32 %v2570_v29, %v2480_v57  ;;  %v2802_v63 = vld [vmem:[#allocation18_spill] sm:$0xff]  ;;  %v2809_v32 = vld [vmem:[#allocation15_spill] sm:$0xff] }
 0x321   : > { %v1208_v13 = vmul.f32 %v2570_v29, %v2469_v28  ;;  %v1218_v53 = vmul.f32 %v2570_v29, %v2486_v41  ;;  %v1212_v55 = vmul.f32 %v2570_v29, %v2477_v58  ;;  %v1222_v36 = vmul.f32 %v2570_v29, %v2800_v60  ;;  %v2805_v41 = vld [vmem:[#allocation7_spill] sm:$0xff] }
 0x322   : > { %v1303_v4 = vmax.f32 %v2801_v61, %v1214_v56  ;;  %v1216_v49 = vmul.f32 %v2570_v29, %v2802_v63  ;;  %v1220_v57 = vmul.f32 %v2570_v29, %v2803_v12  ;;  %v1224_v28 = vmul.f32 %v2570_v29, %v2546_v2 }
 0x323   : > { %v1294_v43 = vmax.f32 %v2804_v26, %v1208_v13  ;;  %v1309_v1 = vmax.f32 %v2805_v41, %v1218_v53  ;;  %v1300_v58 = vmax.f32 %v2806_v39, %v1212_v55  ;;  %v1315_v54 = vmax.f32 %v2807_v23, %v1222_v36 }
 0x324   : > { %1250 = vmax.xlane.f32.xlu1 %v1249_v25  ;;  %1241 = vmax.xlane.f32.xlu0 %v1240_v47  ;;  %v1306_v22 = vmax.f32 %v2808_v21, %v1216_v49  ;;  %v1312_v17 = vmax.f32 %v2809_v32, %v1220_v57  ;;  %v1318_v19 = vmax.f32 %v2810_v50, %v1224_v28 }
 0x328   : > { %1256 = vmax.xlane.f32.xlu1 %v1255_v10  ;;  %1247 = vmax.xlane.f32.xlu0 %v1246_v30 }
 0x32c   : > { %1262 = vmax.xlane.f32.xlu1 %v1261_v7  ;;  %1253 = vmax.xlane.f32.xlu0 %v1252_v11 }
 0x330   : > { %1268 = vmax.xlane.f32.xlu1 %v1267_v62  ;;  %1259 = vmax.xlane.f32.xlu0 %v1258_v59 }
 0x334   : > { %1274 = vmax.xlane.f32.xlu1 %v1273_v8  ;;  %1265 = vmax.xlane.f32.xlu0 %v1264_v52 }
 0x338   : > { %1280 = vmax.xlane.f32.xlu1 %v1279_v46  ;;  %1271 = vmax.xlane.f32.xlu0 %v1270_v37 }
 0x33c   : > { %1286 = vmax.xlane.f32.xlu1 %v1285_v14  ;;  %1277 = vmax.xlane.f32.xlu0 %v1276_v45 }
 0x340   : > { %1292 = vmax.xlane.f32.xlu1 %v1291_v5  ;;  %1283 = vmax.xlane.f32.xlu0 %v1282_v48 }
 0x344   : > { %1298 = vmax.xlane.f32.xlu1 %v1297_v31  ;;  %1289 = vmax.xlane.f32.xlu0 %v1288_v3 }
 0x348   : > { %1304 = vmax.xlane.f32.xlu1 %v1303_v4  ;;  %1295 = vmax.xlane.f32.xlu0 %v1294_v43 }
 0x34c   : > { %1310 = vmax.xlane.f32.xlu1 %v1309_v1  ;;  %1301 = vmax.xlane.f32.xlu0 %v1300_v58 }
 0x350   : > { %1316 = vmax.xlane.f32.xlu1 %v1315_v54  ;;  %1307 = vmax.xlane.f32.xlu0 %v1306_v22 }
 0x354   : > { %1313 = vmax.xlane.f32.xlu0 %v1312_v17 }
 0x358   : > { %1319 = vmax.xlane.f32.xlu0 %v1318_v19 }
 0x3a5   : > { %v1230_v2 = vpop.xlane.xlu1 %1229  ;;  %v1227_v29 = vpop.xlane.xlu0 %1226 }
 0x3a6   : > { %v1321_v27 = vadd.f32 %v1230_v2, %v1227_v29 }
 0x3a9   : > { %v1239_v25 = vpop.xlane.xlu1 %1238  ;;  %v1233_v47 = vpop.xlane.xlu0 %1232 }
 0x3aa   : > { %v1322_v15 = vadd.f32 %v1321_v27, %v1233_v47 }
 0x3ad   : > { %v1245_v34 = vpop.xlane.xlu1 %1244  ;;  %v1236_v35 = vpop.xlane.xlu0 %1235 }
 0x3ae   : > { %v1323_v51 = vadd.f32 %v1322_v15, %v1236_v35 }
 0x3b0   : > { %v1324_v20 = vadd.f32 %v1323_v51, %v1239_v25 }
 0x3b1   : > { %v1251_v42 = vpop.xlane.xlu1 %1250  ;;  %v1242_v10 = vpop.xlane.xlu0 %1241 }
 0x3b2   : > { %v1325_v30 = vadd.f32 %v1324_v20, %v1242_v10 }
 0x3b4   : > { %v1326_v7 = vadd.f32 %v1325_v30, %v1245_v34 }
 0x3b5   : > { %v1257_v24 = vpop.xlane.xlu1 %1256  ;;  %v1248_v6 = vpop.xlane.xlu0 %1247 }
 0x3b6   : > { %v1327_v11 = vadd.f32 %v1326_v7, %v1248_v6 }
 0x3b8   : > { %v1328_v62 = vadd.f32 %v1327_v11, %v1251_v42 }
 0x3b9   : > { %v1263_v59 = vpop.xlane.xlu1 %1262  ;;  %v1254_v8 = vpop.xlane.xlu0 %1253 }
 0x3ba   : > { %v1329_v52 = vadd.f32 %v1328_v62, %v1254_v8 }
 0x3bc   : > { %v1330_v9 = vadd.f32 %v1329_v52, %v1257_v24 }
 0x3bd   : > { %v1269_v18 = vpop.xlane.xlu1 %1268  ;;  %v1260_v38 = vpop.xlane.xlu0 %1259 }
 0x3be   : > { %v1331_v16 = vadd.f32 %v1330_v9, %v1260_v38 }
 0x3c0   : > { %v1332_v0 = vadd.f32 %v1331_v16, %v1263_v59 }
 0x3c1   : > { %v1275_v40 = vpop.xlane.xlu1 %1274  ;;  %v1266_v46 = vpop.xlane.xlu0 %1265 }
 0x3c2   : > { %v1333_v37 = vadd.f32 %v1332_v0, %v1266_v46 }
 0x3c4   : > { %v1334_v44 = vadd.f32 %v1333_v37, %v1269_v18 }
 0x3c5   : > { %v1281_v33 = vpop.xlane.xlu1 %1280  ;;  %v1272_v14 = vpop.xlane.xlu0 %1271 }
 0x3c6   : > { %v1335_v45 = vadd.f32 %v1334_v44, %v1272_v14 }
 0x3c8   : > { %v1336_v5 = vadd.f32 %v1335_v45, %v1275_v40 }
 0x3c9   : > { %v1287_v48 = vpop.xlane.xlu1 %1286  ;;  %v1278_v31 = vpop.xlane.xlu0 %1277 }
 0x3ca   : > { %v1337_v3 = vadd.f32 %v1336_v5, %v1278_v31 }
 0x3cc   : > { %v1338_v56 = vadd.f32 %v1337_v3, %v1281_v33 }
 0x3cd   : > { %v1293_v13 = vpop.xlane.xlu1 %1292  ;;  %v1284_v53 = vpop.xlane.xlu0 %1283 }
 0x3ce   : > { %v1339_v55 = vadd.f32 %v1338_v56, %v1284_v53 }
 0x3d0   : > { %v1340_v60 = vadd.f32 %v1339_v55, %v1287_v48 }
 0x3d1   : > { %v1299_v36 = vpop.xlane.xlu1 %1298  ;;  %v1290_v61 = vpop.xlane.xlu0 %1289 }
 0x3d2   : > { %v1341_v4 = vadd.f32 %v1340_v60, %v1290_v61 }
 0x3d4   : > { %v1342_v63 = vadd.f32 %v1341_v4, %v1293_v13 }
 0x3d5   : > { %v1296_v49 = vpop.xlane.xlu0 %1295  ;;  %v1305_v57 = vpop.xlane.xlu1 %1304 }
 0x3d6   : > { %v1343_v12 = vadd.f32 %v1342_v63, %v1296_v49 }
 0x3d8   : > { %v1344_v28 = vadd.f32 %v1343_v12, %v1299_v36 }
 0x3d9   : > { %v1302_v26 = vpop.xlane.xlu0 %1301  ;;  %v1311_v1 = vpop.xlane.xlu1 %1310 }
 0x3da   : > { %v1345_v43 = vadd.f32 %v1344_v28, %v1302_v26 }
 0x3dc   : > { %v1346_v41 = vadd.f32 %v1345_v43, %v1305_v57 }
 0x3dd   : > { %v1308_v39 = vpop.xlane.xlu0 %1307  ;;  %v1317_v22 = vpop.xlane.xlu1 %1316 }
 0x3de   : > { %v1347_v58 = vadd.f32 %v1346_v41, %v1308_v39 }
 0x3e0   : > { %v1348_v23 = vadd.f32 %v1347_v58, %v1311_v1 }
 0x3e1   : > { %v1314_v54 = vpop.xlane.xlu0 %1313 }
 0x3e2   : > { %v1349_v21 = vadd.f32 %v1348_v23, %v1314_v54 }
 0x3e4   : > { %v1350_v32 = vadd.f32 %v1349_v21, %v1317_v22 }
 0x3e5   : > { %v1320_v17 = vpop.xlane.xlu0 %1319 }
 0x3e6   : > { %v1351_v50 = vadd.f32 %v1350_v32, %v1320_v17 }
 0x3e8   : > { %v1352_v19 = vrot.slane %v1351_v50, 4 }
 0x3ea   : > { %v1353_v2 = vadd.f32 %v1352_v19, %v1351_v50 }
 0x3ec   : > { %v1354_v29 = vrot.slane %v1353_v2, 2 }
 0x3ee   : > { %v1355_v25 = vadd.f32 %v1354_v29, %v1353_v2 }
 0x3f0   : > { %v1356_v47 = vrot.slane %v1355_v25, 1 }
 0x3f2   : > { %v1357_v27 = vadd.f32 %v1356_v47, %v1355_v25 }
 0x3f4   : > { %v1358_v15 = vmul.f32 0.00390625, %v1357_v27 }
 0x3f6   : > { %1635 = vlog2.f32 %v1358_v15 }
 0x400   : > { %v1636_v34 = vpop.eup %1635 }
 0x401   : > { %v1360_v35 = vmul.f32 0.6931472, %v1636_v34 }
 0x403   : > { %v1361_v51 = vsub.f32 0.0, %v1360_v35 }
 0x405   : > { %1362 = vst [vmem:[%s186_s4] sm:$0x1] %v1361_v51 }
 0x406 PF: > { %s13_s12 = sadd.s32 1, %s1643_s12  }
 0x407   : > { %p10_p4 = scmp.ge.s32.totalorder %s13_s12, 4  }
 0x409   :  { %12 = sbr.rel (!%p10_p4) target bundleno = 1 (0x1), region = 65 }

</bundles_post_ra>
